<compile_context>
chip_gen: v7x
topology: tpu7x:2x2x1
jax: 0.10.0
libtpu: 0.0.40
codegen_flags: <defaults>
</compile_context>

<pallas_src>
import functools

import jax
import jax.numpy as jnp
from jax.experimental import pallas as pl

EPS = 1e-5                     # PyTorch BatchNorm1d default eps
MATMUL_DTYPE = jnp.bfloat16    # use jnp.float32 on v5e if bf16 drift is unwanted


# --------------------------------------------------------------------------- kernel
def _fused_autoencoder_kernel(
    x_ref,
    enc1_w, enc1_b, bn1_g, bn1_b,
    enc2_w, enc2_b, bn2_g, bn2_b,
    s2v_w, s2v_b,
    v2s_w, v2s_b,
    dec1_w, dec1_b, bn3_g, bn3_b,
    dec2_w, dec2_b, bn4_g, bn4_b,
    out_w, out_b,
    out_ref, senc_ref, vec_ref,
    *, batch, length,
):
    """Whole forward pass.  Activations are (L*B, C) rows, row index = l*B + b."""
    B, L = batch, length

    def mm(a, w):  # MXU matmul, f32 accumulation; weights already in MATMUL_DTYPE
        return jnp.dot(a.astype(w.dtype), w, preferred_element_type=jnp.float32)

    def conv_bn_relu(x, w_ref, b_ref, g_ref, beta_ref):
        # k=3 / pad=1 conv: three tap matmuls on row-shifted copies.  Boundary
        # positions (l=0 / l=L-1) get explicit zero row-blocks.
        cin = x.shape[1]
        zrow = jnp.zeros((B, cin), jnp.float32)
        x_m1 = jnp.concatenate([zrow, x[:(L - 1) * B, :]], axis=0)   # input at l-1
        x_p1 = jnp.concatenate([x[B:, :], zrow], axis=0)             # input at l+1
        acc = (mm(x_m1, w_ref[0]) + mm(x, w_ref[1]) + mm(x_p1, w_ref[2])
               + b_ref[...])                                         # (L*B, Cout)
        # BatchNorm1d training-mode stats over the B*L samples per channel:
        # a plain per-channel row mean (no pooling matmuls needed in this layout).
        mean = jnp.mean(acc, axis=0, keepdims=True)                  # E[x]
        msq = jnp.mean(acc * acc, axis=0, keepdims=True)             # E[x^2]
        var = jnp.maximum(msq - mean * mean, 0.0)                    # biased var
        scale = g_ref[...] * jax.lax.rsqrt(var + EPS)                # EUP rsqrt
        shift = beta_ref[...] - mean * scale
        return jnp.maximum(acc * scale + shift, 0.0)                 # fused BN+ReLU

    x = x_ref[...]                                                   # (L*B, E)

    # ---- encoder ----
    h1 = conv_bn_relu(x, enc1_w, enc1_b, bn1_g, bn1_b)               # (L*B, H)
    h2 = conv_bn_relu(h1, enc2_w, enc2_b, bn2_g, bn2_b)              # (L*B, H)
    H = h2.shape[1]

    # seq_enc emitted lane-dense as (B, L*H), column index l*H + h; the
    # (B,L,H)->(B,H,L) transpose happens in the wrapper (trivial XLA copy).
    for l in range(L):
        senc_ref[:, l * H:(l + 1) * H] = h2[l * B:(l + 1) * B, :]
    h2_cols = senc_ref[...]                                          # (B, L*H)

    # ---- seq2vec: Flatten + Linear + ReLU (flatten perm baked into s2v_w rows) ----
    vec = jnp.maximum(mm(h2_cols, s2v_w[...]) + s2v_b[...], 0.0)     # (B, H)
    vec_ref[...] = vec

    # ---- vec2seq: Linear + ReLU + View (view perm baked into v2s_w columns) ----
    dcols = jnp.maximum(mm(vec, v2s_w[...]) + v2s_b[...], 0.0)       # (B, L*H)
    # back to the (L*B, H) row layout for the decoder convs
    dseq = jnp.concatenate([dcols[:, l * H:(l + 1) * H] for l in range(L)], axis=0)

    # ---- decoder (ConvTranspose1d == conv with flipped taps, baked at init) ----
    d1 = conv_bn_relu(dseq, dec1_w, dec1_b, bn3_g, bn3_b)            # (L*B, H)
    d2 = conv_bn_relu(d1, dec2_w, dec2_b, bn4_g, bn4_b)              # (L*B, H)

    # ---- vocab projection: one (H, V) matmul, then lane-dense (B, L*V) output ----
    o_rows = mm(d2, out_w[...]) + out_b[...]                         # (L*B, V)
    V = o_rows.shape[1]
    for l in range(L):
        out_ref[:, l * V:(l + 1) * V] = o_rows[l * B:(l + 1) * B, :]


# --------------------------------------------------------------------------- wrapper
def autoencoder_forward(tokens, params):
    B, L = tokens.shape
    V, E = params["embedding"].shape
    H = params["s2v_b"].shape[-1]
    LB = L * B

    # Embedding lookup (gather) stays as one plain-JAX op outside the kernel.
    emb = jnp.take(params["embedding"], tokens, axis=0)              # (B, L, E)
    x_rows = emb.transpose(1, 0, 2).reshape(LB, E)                   # row = l*B + b

    operands = (
        x_rows,
        params["enc1_w"], params["enc1_b"], params["bn1_g"], params["bn1_b"],
        params["enc2_w"], params["enc2_b"], params["bn2_g"], params["bn2_b"],
        params["s2v_w"], params["s2v_b"],
        params["v2s_w"], params["v2s_b"],
        params["dec1_w"], params["dec1_b"], params["bn3_g"], params["bn3_b"],
        params["dec2_w"], params["dec2_b"], params["bn4_g"], params["bn4_b"],
        params["out_w"], params["out_b"],
    )
    out_shapes = (
        jax.ShapeDtypeStruct((B, L * V), jnp.float32),   # logits, lane-dense
        jax.ShapeDtypeStruct((B, L * H), jnp.float32),   # seq_enc, lane-dense
        jax.ShapeDtypeStruct((B, H), jnp.float32),       # bottleneck vector
    )

    mm_flops = lambda m, k, n: 2 * m * k * n
    flops = (mm_flops(LB, 3 * E, H)          # enc1 (3 taps)
             + 3 * mm_flops(LB, 3 * H, H)    # enc2, dec1, dec2
             + mm_flops(B, L * H, H)         # seq2vec
             + mm_flops(B, H, L * H)         # vec2seq
             + mm_flops(LB, H, V))           # vocab projection
    bytes_accessed = (sum(int(o.size) * o.dtype.itemsize for o in operands)
                      + sum(int(s.size) * 4 for s in out_shapes))
    cost = pl.CostEstimate(flops=int(flops), transcendentals=int(4 * H),
                           bytes_accessed=int(bytes_accessed))

    out_cols, senc_cols, vec = pl.pallas_call(
        functools.partial(_fused_autoencoder_kernel, batch=B, length=L),
        out_shape=out_shapes,
        cost_estimate=cost,
    )(*operands)

    out = out_cols.reshape(B, L, V)                      # col l*V + v -> (B, L, V)
    seq_enc = senc_cols.reshape(B, L, H).transpose(0, 2, 1)   # -> (B, H, L)
    indices = None
    return out, seq_enc, vec, indices


# --------------------------------------------------------------------------- params
def init_torch_params(key, vocab, dim_emb, dim_hid, len_seq):
    """Random parameters in PyTorch layout (independent PRNG keys)."""
    V, E, H, L = vocab, dim_emb, dim_hid, len_seq
    keys = iter(jax.random.split(key, 24))
    rn = lambda shape, s=0.1: s * jax.random.normal(next(keys), shape, jnp.float32)
    return {
        "embedding": rn((V, E), 1.0).at[0].set(0.0),      # padding row 0
        "enc1_w": rn((H, E, 3)), "enc1_b": rn((H,)),      # Conv1d(E, H, 3, pad=1)
        "bn1_g": 1.0 + rn((H,)), "bn1_b": rn((H,), 0.05),
        "enc2_w": rn((H, H, 3)), "enc2_b": rn((H,)),      # Conv1d(H, H, 3, pad=1)
        "bn2_g": 1.0 + rn((H,)), "bn2_b": rn((H,), 0.05),
        "s2v_w": rn((H, L * H)), "s2v_b": rn((H,)),       # Linear(L*H, H)
        "v2s_w": rn((L * H, H)), "v2s_b": rn((L * H,)),   # Linear(H, L*H)
        "dec1_w": rn((H, H, 3)), "dec1_b": rn((H,)),      # ConvTranspose1d(H,H,3,p=1)
        "bn3_g": 1.0 + rn((H,)), "bn3_b": rn((H,), 0.05),
        "dec2_w": rn((H, H, 3)), "dec2_b": rn((H,)),
        "bn4_g": 1.0 + rn((H,)), "bn4_b": rn((H,), 0.05),
        "out_w": rn((V, H)), "out_b": rn((V,)),           # Linear(H, V)
    }


def pack_params(t, len_seq, matmul_dtype=MATMUL_DTYPE):
    """Transform PyTorch-layout params into the fused kernel's layout."""
    H = t["enc1_w"].shape[0]
    L = len_seq
    # conv taps as (3, Cin, Cout); ConvTranspose == conv with flipped kernel.
    conv_taps = lambda w: jnp.stack([w[:, :, k].T for k in range(3)]).astype(matmul_dtype)
    convT_taps = lambda w: jnp.stack([w[:, :, 2 - k] for k in range(3)]).astype(matmul_dtype)
    row = lambda v: jnp.asarray(v, jnp.float32).reshape(1, -1)

    c = jnp.arange(L * H)
    torch_flat = (c % H) * L + (c // H)   # kernel column l*H+h -> torch index h*L+l

    return {
        "embedding": t["embedding"],
        "enc1_w": conv_taps(t["enc1_w"]), "enc1_b": row(t["enc1_b"]),
        "bn1_g": row(t["bn1_g"]), "bn1_b": row(t["bn1_b"]),
        "enc2_w": conv_taps(t["enc2_w"]), "enc2_b": row(t["enc2_b"]),
        "bn2_g": row(t["bn2_g"]), "bn2_b": row(t["bn2_b"]),
        "s2v_w": t["s2v_w"].T[torch_flat, :].astype(matmul_dtype),
        "s2v_b": row(t["s2v_b"]),
        "v2s_w": t["v2s_w"].T[:, torch_flat].astype(matmul_dtype),
        "v2s_b": row(t["v2s_b"][torch_flat]),
        "dec1_w": convT_taps(t["dec1_w"]), "dec1_b": row(t["dec1_b"]),
        "bn3_g": row(t["bn3_g"]), "bn3_b": row(t["bn3_b"]),
        "dec2_w": convT_taps(t["dec2_w"]), "dec2_b": row(t["dec2_b"]),
        "bn4_g": row(t["bn4_g"]), "bn4_b": row(t["bn4_b"]),
        "out_w": t["out_w"].T.astype(matmul_dtype), "out_b": row(t["out_b"]),
    }


# --------------------------------------------------------------------------- reference
def ref_forward(tokens, t):
    """Pure-JAX reference of the PyTorch forward (f32, HIGHEST precision)."""
    P = jax.lax.Precision.HIGHEST
    B, L = tokens.shape
    emb = jnp.take(t["embedding"], tokens, axis=0)                   # (B, L, E)
    x = emb.transpose(0, 2, 1)                                       # (B, E, L)

    def conv1d(x, w, b):
        xp = jnp.pad(x, ((0, 0), (0, 0), (1, 1)))
        y = sum(jnp.einsum("oi,bil->bol", w[:, :, k], xp[:, :, k:k + L], precision=P)
                for k in range(3))
        return y + b[None, :, None]

    def convT1d(x, w, b):
        xp = jnp.pad(x, ((0, 0), (0, 0), (1, 1)))
        y = sum(jnp.einsum("io,bil->bol", w[:, :, k], xp[:, :, 2 - k:2 - k + L], precision=P)
                for k in range(3))
        return y + b[None, :, None]

    def bn_relu(x, g, b):
        m = x.mean(axis=(0, 2), keepdims=True)
        v = x.var(axis=(0, 2), keepdims=True)
        y = g[None, :, None] * (x - m) / jnp.sqrt(v + EPS) + b[None, :, None]
        return jnp.maximum(y, 0.0)

    h = bn_relu(conv1d(x, t["enc1_w"], t["enc1_b"]), t["bn1_g"], t["bn1_b"])
    seq_enc = bn_relu(conv1d(h, t["enc2_w"], t["enc2_b"]), t["bn2_g"], t["bn2_b"])
    vec = jnp.maximum(
        jnp.einsum("bi,oi->bo", seq_enc.reshape(B, -1), t["s2v_w"], precision=P)
        + t["s2v_b"], 0.0)
    seq_repr = jnp.maximum(
        jnp.einsum("bi,oi->bo", vec, t["v2s_w"], precision=P) + t["v2s_b"],
        0.0).reshape(B, -1, L)
    d = bn_relu(convT1d(seq_repr, t["dec1_w"], t["dec1_b"]), t["bn3_g"], t["bn3_b"])
    d = bn_relu(convT1d(d, t["dec2_w"], t["dec2_b"]), t["bn4_g"], t["bn4_b"])
    out = jnp.einsum("blh,vh->blv", d.transpose(0, 2, 1), t["out_w"], precision=P) \
        + t["out_b"]
    return out, seq_enc, vec


# --------------------------------------------------------------------------- main
if __name__ == "__main__":
    vocab_size, dim_emb, dim_hid, len_seq, batch = 16, 8, 32, 8, 2

    key = jax.random.PRNGKey(0)
    k_params, k_tok = jax.random.split(key)
    raw = init_torch_params(k_params, vocab_size, dim_emb, dim_hid, len_seq)
    params = pack_params(raw, len_seq)    # bf16 matmul weights, f32 BN/bias
    tokens = jax.random.randint(k_tok, (batch, len_seq), 0, vocab_size, dtype=jnp.int32)

    fwd = jax.jit(autoencoder_forward)
    out, seq_enc, vec, indices = fwd(tokens, params)
    jax.block_until_ready((out, seq_enc, vec))

    assert out.shape == (batch, len_seq, vocab_size)
    assert seq_enc.shape == (batch, dim_hid, len_seq)
    assert vec.shape == (batch, dim_hid)
    assert indices is None
    assert bool(jnp.all(jnp.isfinite(out)))

    # Tolerance check against a pure-JAX f32 reference (loose bound covers the
    # bf16 matmul operands inside the kernel; a layout bug would blow past it).
    ro, rs, rv = jax.jit(ref_forward)(tokens, raw)
    assert float(jnp.max(jnp.abs(out - ro))) < 0.15
    assert float(jnp.max(jnp.abs(seq_enc - rs))) < 0.15
    assert float(jnp.max(jnp.abs(vec - rv))) < 0.15

    print("KERNEL_OK")
</pallas_src>

<mosaic_0001>
module attributes {stable_mosaic.version = 11 : i64} {
  func.func @_fused_autoencoder_kernel(%arg0: memref<16x8xf32, #tpu.memory_space<vmem>>, %arg1: memref<3x8x32xbf16, #tpu.memory_space<vmem>>, %arg2: memref<1x32xf32, #tpu.memory_space<vmem>>, %arg3: memref<1x32xf32, #tpu.memory_space<vmem>>, %arg4: memref<1x32xf32, #tpu.memory_space<vmem>>, %arg5: memref<3x32x32xbf16, #tpu.memory_space<vmem>>, %arg6: memref<1x32xf32, #tpu.memory_space<vmem>>, %arg7: memref<1x32xf32, #tpu.memory_space<vmem>>, %arg8: memref<1x32xf32, #tpu.memory_space<vmem>>, %arg9: memref<256x32xbf16, #tpu.memory_space<vmem>>, %arg10: memref<1x32xf32, #tpu.memory_space<vmem>>, %arg11: memref<32x256xbf16, #tpu.memory_space<vmem>>, %arg12: memref<1x256xf32, #tpu.memory_space<vmem>>, %arg13: memref<3x32x32xbf16, #tpu.memory_space<vmem>>, %arg14: memref<1x32xf32, #tpu.memory_space<vmem>>, %arg15: memref<1x32xf32, #tpu.memory_space<vmem>>, %arg16: memref<1x32xf32, #tpu.memory_space<vmem>>, %arg17: memref<3x32x32xbf16, #tpu.memory_space<vmem>>, %arg18: memref<1x32xf32, #tpu.memory_space<vmem>>, %arg19: memref<1x32xf32, #tpu.memory_space<vmem>>, %arg20: memref<1x32xf32, #tpu.memory_space<vmem>>, %arg21: memref<32x16xbf16, #tpu.memory_space<vmem>>, %arg22: memref<1x16xf32, #tpu.memory_space<vmem>>, %arg23: memref<2x128xf32, #tpu.memory_space<vmem>>, %arg24: memref<2x256xf32, #tpu.memory_space<vmem>>, %arg25: memref<2x32xf32, #tpu.memory_space<vmem>>) attributes {dimension_semantics = [], scalar_prefetch = 0 : i64, scratch_operands = 0 : i64, tpu.core_type = #tpu.core_type<tc>} {
    %c0 = arith.constant 0 : index
    %c0_0 = arith.constant 0 : index
    %0 = vector.load %arg0[%c0, %c0_0] : memref<16x8xf32, #tpu.memory_space<vmem>>, vector<16x8xf32>
    %cst = arith.constant 0.000000e+00 : f32
    %1 = vector.broadcast %cst : f32 to vector<2x8xf32>
    %2 = vector.extract_strided_slice %0 {offsets = [0, 0], sizes = [14, 8], strides = [1, 1]} : vector<16x8xf32> to vector<14x8xf32>
    %3 = tpu.concatenate %1, %2 in 0 : vector<2x8xf32>, vector<14x8xf32> -> vector<16x8xf32>
    %4 = vector.extract_strided_slice %0 {offsets = [2, 0], sizes = [14, 8], strides = [1, 1]} : vector<16x8xf32> to vector<14x8xf32>
    %5 = tpu.concatenate %4, %1 in 0 : vector<14x8xf32>, vector<2x8xf32> -> vector<16x8xf32>
    %c0_1 = arith.constant 0 : index
    %c0_2 = arith.constant 0 : index
    %c0_3 = arith.constant 0 : index
    %6 = vector.load %arg1[%c0_1, %c0_2, %c0_3] : memref<3x8x32xbf16, #tpu.memory_space<vmem>>, vector<1x8x32xbf16>
    %7 = vector.shape_cast %6 : vector<1x8x32xbf16> to vector<8x32xbf16>
    %8 = arith.truncf %3 : vector<16x8xf32> to vector<16x8xbf16>
    %cst_4 = arith.constant dense<0.000000e+00> : vector<16x32xf32>
    %9 = tpu.matmul %8, %7, %cst_4 {dimension_numbers = #tpu.dot_dimension_numbers<[1], [0], [0], [1], [0, 0, 1, 1], [], []>} : vector<16x8xbf16>, vector<8x32xbf16>, vector<16x32xf32> -> vector<16x32xf32>
    %c1 = arith.constant 1 : index
    %c0_5 = arith.constant 0 : index
    %c0_6 = arith.constant 0 : index
    %10 = vector.load %arg1[%c1, %c0_5, %c0_6] : memref<3x8x32xbf16, #tpu.memory_space<vmem>>, vector<1x8x32xbf16>
    %11 = vector.shape_cast %10 : vector<1x8x32xbf16> to vector<8x32xbf16>
    %12 = arith.truncf %0 : vector<16x8xf32> to vector<16x8xbf16>
    %cst_7 = arith.constant dense<0.000000e+00> : vector<16x32xf32>
    %13 = tpu.matmul %12, %11, %cst_7 {dimension_numbers = #tpu.dot_dimension_numbers<[1], [0], [0], [1], [0, 0, 1, 1], [], []>} : vector<16x8xbf16>, vector<8x32xbf16>, vector<16x32xf32> -> vector<16x32xf32>
    %14 = arith.addf %9, %13 : vector<16x32xf32>
    %c2 = arith.constant 2 : index
    %c0_8 = arith.constant 0 : index
    %c0_9 = arith.constant 0 : index
    %15 = vector.load %arg1[%c2, %c0_8, %c0_9] : memref<3x8x32xbf16, #tpu.memory_space<vmem>>, vector<1x8x32xbf16>
    %16 = vector.shape_cast %15 : vector<1x8x32xbf16> to vector<8x32xbf16>
    %17 = arith.truncf %5 : vector<16x8xf32> to vector<16x8xbf16>
    %cst_10 = arith.constant dense<0.000000e+00> : vector<16x32xf32>
    %18 = tpu.matmul %17, %16, %cst_10 {dimension_numbers = #tpu.dot_dimension_numbers<[1], [0], [0], [1], [0, 0, 1, 1], [], []>} : vector<16x8xbf16>, vector<8x32xbf16>, vector<16x32xf32> -> vector<16x32xf32>
    %19 = arith.addf %14, %18 : vector<16x32xf32>
    %c0_11 = arith.constant 0 : index
    %c0_12 = arith.constant 0 : index
    %20 = vector.load %arg2[%c0_11, %c0_12] : memref<1x32xf32, #tpu.memory_space<vmem>>, vector<1x32xf32>
    %21 = vector.broadcast %20 : vector<1x32xf32> to vector<16x32xf32>
    %22 = arith.addf %19, %21 : vector<16x32xf32>
    %cst_13 = arith.constant dense<0.000000e+00> : vector<32xf32>
    %23 = vector.multi_reduction <add>, %22, %cst_13 [0] : vector<16x32xf32> to vector<32xf32>
    %24 = vector.shape_cast %23 : vector<32xf32> to vector<1x32xf32>
    %cst_14 = arith.constant 1.600000e+01 : f32
    %25 = vector.broadcast %cst_14 : f32 to vector<1x32xf32>
    %26 = arith.divf %24, %25 : vector<1x32xf32>
    %27 = arith.mulf %22, %22 : vector<16x32xf32>
    %cst_15 = arith.constant dense<0.000000e+00> : vector<32xf32>
    %28 = vector.multi_reduction <add>, %27, %cst_15 [0] : vector<16x32xf32> to vector<32xf32>
    %29 = vector.shape_cast %28 : vector<32xf32> to vector<1x32xf32>
    %cst_16 = arith.constant 1.600000e+01 : f32
    %30 = vector.broadcast %cst_16 : f32 to vector<1x32xf32>
    %31 = arith.divf %29, %30 : vector<1x32xf32>
    %32 = arith.mulf %26, %26 : vector<1x32xf32>
    %33 = arith.subf %31, %32 : vector<1x32xf32>
    %cst_17 = arith.constant 0.000000e+00 : f32
    %34 = vector.broadcast %cst_17 : f32 to vector<1x32xf32>
    %35 = arith.maximumf %33, %34 : vector<1x32xf32>
    %c0_18 = arith.constant 0 : index
    %c0_19 = arith.constant 0 : index
    %36 = vector.load %arg3[%c0_18, %c0_19] : memref<1x32xf32, #tpu.memory_space<vmem>>, vector<1x32xf32>
    %cst_20 = arith.constant 9.99999974E-6 : f32
    %37 = vector.broadcast %cst_20 : f32 to vector<1x32xf32>
    %38 = arith.addf %35, %37 : vector<1x32xf32>
    %39 = math.rsqrt %38 : vector<1x32xf32>
    %40 = arith.mulf %36, %39 : vector<1x32xf32>
    %c0_21 = arith.constant 0 : index
    %c0_22 = arith.constant 0 : index
    %41 = vector.load %arg4[%c0_21, %c0_22] : memref<1x32xf32, #tpu.memory_space<vmem>>, vector<1x32xf32>
    %42 = arith.mulf %26, %40 : vector<1x32xf32>
    %43 = arith.subf %41, %42 : vector<1x32xf32>
    %44 = vector.broadcast %40 : vector<1x32xf32> to vector<16x32xf32>
    %45 = arith.mulf %22, %44 : vector<16x32xf32>
    %46 = vector.broadcast %43 : vector<1x32xf32> to vector<16x32xf32>
    %47 = arith.addf %45, %46 : vector<16x32xf32>
    %cst_23 = arith.constant 0.000000e+00 : f32
    %48 = vector.broadcast %cst_23 : f32 to vector<16x32xf32>
    %49 = arith.maximumf %47, %48 : vector<16x32xf32>
    %cst_24 = arith.constant 0.000000e+00 : f32
    %50 = vector.broadcast %cst_24 : f32 to vector<2x32xf32>
    %51 = vector.extract_strided_slice %49 {offsets = [0, 0], sizes = [14, 32], strides = [1, 1]} : vector<16x32xf32> to vector<14x32xf32>
    %52 = tpu.concatenate %50, %51 in 0 : vector<2x32xf32>, vector<14x32xf32> -> vector<16x32xf32>
    %53 = vector.extract_strided_slice %49 {offsets = [2, 0], sizes = [14, 32], strides = [1, 1]} : vector<16x32xf32> to vector<14x32xf32>
    %54 = tpu.concatenate %53, %50 in 0 : vector<14x32xf32>, vector<2x32xf32> -> vector<16x32xf32>
    %c0_25 = arith.constant 0 : index
    %c0_26 = arith.constant 0 : index
    %c0_27 = arith.constant 0 : index
    %55 = vector.load %arg5[%c0_25, %c0_26, %c0_27] : memref<3x32x32xbf16, #tpu.memory_space<vmem>>, vector<1x32x32xbf16>
    %56 = vector.shape_cast %55 : vector<1x32x32xbf16> to vector<32x32xbf16>
    %57 = arith.truncf %52 : vector<16x32xf32> to vector<16x32xbf16>
    %cst_28 = arith.constant dense<0.000000e+00> : vector<16x32xf32>
    %58 = tpu.matmul %57, %56, %cst_28 {dimension_numbers = #tpu.dot_dimension_numbers<[1], [0], [0], [1], [0, 0, 1, 1], [], []>} : vector<16x32xbf16>, vector<32x32xbf16>, vector<16x32xf32> -> vector<16x32xf32>
    %c1_29 = arith.constant 1 : index
    %c0_30 = arith.constant 0 : index
    %c0_31 = arith.constant 0 : index
    %59 = vector.load %arg5[%c1_29, %c0_30, %c0_31] : memref<3x32x32xbf16, #tpu.memory_space<vmem>>, vector<1x32x32xbf16>
    %60 = vector.shape_cast %59 : vector<1x32x32xbf16> to vector<32x32xbf16>
    %61 = arith.truncf %49 : vector<16x32xf32> to vector<16x32xbf16>
    %cst_32 = arith.constant dense<0.000000e+00> : vector<16x32xf32>
    %62 = tpu.matmul %61, %60, %cst_32 {dimension_numbers = #tpu.dot_dimension_numbers<[1], [0], [0], [1], [0, 0, 1, 1], [], []>} : vector<16x32xbf16>, vector<32x32xbf16>, vector<16x32xf32> -> vector<16x32xf32>
    %63 = arith.addf %58, %62 : vector<16x32xf32>
    %c2_33 = arith.constant 2 : index
    %c0_34 = arith.constant 0 : index
    %c0_35 = arith.constant 0 : index
    %64 = vector.load %arg5[%c2_33, %c0_34, %c0_35] : memref<3x32x32xbf16, #tpu.memory_space<vmem>>, vector<1x32x32xbf16>
    %65 = vector.shape_cast %64 : vector<1x32x32xbf16> to vector<32x32xbf16>
    %66 = arith.truncf %54 : vector<16x32xf32> to vector<16x32xbf16>
    %cst_36 = arith.constant dense<0.000000e+00> : vector<16x32xf32>
    %67 = tpu.matmul %66, %65, %cst_36 {dimension_numbers = #tpu.dot_dimension_numbers<[1], [0], [0], [1], [0, 0, 1, 1], [], []>} : vector<16x32xbf16>, vector<32x32xbf16>, vector<16x32xf32> -> vector<16x32xf32>
    %68 = arith.addf %63, %67 : vector<16x32xf32>
    %c0_37 = arith.constant 0 : index
    %c0_38 = arith.constant 0 : index
    %69 = vector.load %arg6[%c0_37, %c0_38] : memref<1x32xf32, #tpu.memory_space<vmem>>, vector<1x32xf32>
    %70 = vector.broadcast %69 : vector<1x32xf32> to vector<16x32xf32>
    %71 = arith.addf %68, %70 : vector<16x32xf32>
    %cst_39 = arith.constant dense<0.000000e+00> : vector<32xf32>
    %72 = vector.multi_reduction <add>, %71, %cst_39 [0] : vector<16x32xf32> to vector<32xf32>
    %73 = vector.shape_cast %72 : vector<32xf32> to vector<1x32xf32>
    %cst_40 = arith.constant 1.600000e+01 : f32
    %74 = vector.broadcast %cst_40 : f32 to vector<1x32xf32>
    %75 = arith.divf %73, %74 : vector<1x32xf32>
    %76 = arith.mulf %71, %71 : vector<16x32xf32>
    %cst_41 = arith.constant dense<0.000000e+00> : vector<32xf32>
    %77 = vector.multi_reduction <add>, %76, %cst_41 [0] : vector<16x32xf32> to vector<32xf32>
    %78 = vector.shape_cast %77 : vector<32xf32> to vector<1x32xf32>
    %cst_42 = arith.constant 1.600000e+01 : f32
    %79 = vector.broadcast %cst_42 : f32 to vector<1x32xf32>
    %80 = arith.divf %78, %79 : vector<1x32xf32>
    %81 = arith.mulf %75, %75 : vector<1x32xf32>
    %82 = arith.subf %80, %81 : vector<1x32xf32>
    %cst_43 = arith.constant 0.000000e+00 : f32
    %83 = vector.broadcast %cst_43 : f32 to vector<1x32xf32>
    %84 = arith.maximumf %82, %83 : vector<1x32xf32>
    %c0_44 = arith.constant 0 : index
    %c0_45 = arith.constant 0 : index
    %85 = vector.load %arg7[%c0_44, %c0_45] : memref<1x32xf32, #tpu.memory_space<vmem>>, vector<1x32xf32>
    %cst_46 = arith.constant 9.99999974E-6 : f32
    %86 = vector.broadcast %cst_46 : f32 to vector<1x32xf32>
    %87 = arith.addf %84, %86 : vector<1x32xf32>
    %88 = math.rsqrt %87 : vector<1x32xf32>
    %89 = arith.mulf %85, %88 : vector<1x32xf32>
    %c0_47 = arith.constant 0 : index
    %c0_48 = arith.constant 0 : index
    %90 = vector.load %arg8[%c0_47, %c0_48] : memref<1x32xf32, #tpu.memory_space<vmem>>, vector<1x32xf32>
    %91 = arith.mulf %75, %89 : vector<1x32xf32>
    %92 = arith.subf %90, %91 : vector<1x32xf32>
    %93 = vector.broadcast %89 : vector<1x32xf32> to vector<16x32xf32>
    %94 = arith.mulf %71, %93 : vector<16x32xf32>
    %95 = vector.broadcast %92 : vector<1x32xf32> to vector<16x32xf32>
    %96 = arith.addf %94, %95 : vector<16x32xf32>
    %cst_49 = arith.constant 0.000000e+00 : f32
    %97 = vector.broadcast %cst_49 : f32 to vector<16x32xf32>
    %98 = arith.maximumf %96, %97 : vector<16x32xf32>
    %99 = vector.extract_strided_slice %98 {offsets = [0, 0], sizes = [2, 32], strides = [1, 1]} : vector<16x32xf32> to vector<2x32xf32>
    %c0_50 = arith.constant 0 : index
    %c0_51 = arith.constant 0 : index
    %100 = vector.load %arg24[%c0_50, %c0_51] : memref<2x256xf32, #tpu.memory_space<vmem>>, vector<2x32xf32>
    tpu.vector_store %arg24[%c0_50, %c0_51], %99 {strides = array<i32>} : memref<2x256xf32, #tpu.memory_space<vmem>>, vector<2x32xf32>,
    %101 = vector.extract_strided_slice %98 {offsets = [2, 0], sizes = [2, 32], strides = [1, 1]} : vector<16x32xf32> to vector<2x32xf32>
    %c0_52 = arith.constant 0 : index
    %c32 = arith.constant 32 : index
    %102 = vector.load %arg24[%c0_52, %c32] : memref<2x256xf32, #tpu.memory_space<vmem>>, vector<2x32xf32>
    tpu.vector_store %arg24[%c0_52, %c32], %101 {strides = array<i32>} : memref<2x256xf32, #tpu.memory_space<vmem>>, vector<2x32xf32>,
    %103 = vector.extract_strided_slice %98 {offsets = [4, 0], sizes = [2, 32], strides = [1, 1]} : vector<16x32xf32> to vector<2x32xf32>
    %c0_53 = arith.constant 0 : index
    %c64 = arith.constant 64 : index
    %104 = vector.load %arg24[%c0_53, %c64] : memref<2x256xf32, #tpu.memory_space<vmem>>, vector<2x32xf32>
    tpu.vector_store %arg24[%c0_53, %c64], %103 {strides = array<i32>} : memref<2x256xf32, #tpu.memory_space<vmem>>, vector<2x32xf32>,
    %105 = vector.extract_strided_slice %98 {offsets = [6, 0], sizes = [2, 32], strides = [1, 1]} : vector<16x32xf32> to vector<2x32xf32>
    %c0_54 = arith.constant 0 : index
    %c96 = arith.constant 96 : index
    %106 = vector.load %arg24[%c0_54, %c96] : memref<2x256xf32, #tpu.memory_space<vmem>>, vector<2x32xf32>
    tpu.vector_store %arg24[%c0_54, %c96], %105 {strides = array<i32>} : memref<2x256xf32, #tpu.memory_space<vmem>>, vector<2x32xf32>,
    %107 = vector.extract_strided_slice %98 {offsets = [8, 0], sizes = [2, 32], strides = [1, 1]} : vector<16x32xf32> to vector<2x32xf32>
    %c0_55 = arith.constant 0 : index
    %c128 = arith.constant 128 : index
    %108 = vector.load %arg24[%c0_55, %c128] : memref<2x256xf32, #tpu.memory_space<vmem>>, vector<2x32xf32>
    tpu.vector_store %arg24[%c0_55, %c128], %107 {strides = array<i32>} : memref<2x256xf32, #tpu.memory_space<vmem>>, vector<2x32xf32>,
    %109 = vector.extract_strided_slice %98 {offsets = [10, 0], sizes = [2, 32], strides = [1, 1]} : vector<16x32xf32> to vector<2x32xf32>
    %c0_56 = arith.constant 0 : index
    %c160 = arith.constant 160 : index
    %110 = vector.load %arg24[%c0_56, %c160] : memref<2x256xf32, #tpu.memory_space<vmem>>, vector<2x32xf32>
    tpu.vector_store %arg24[%c0_56, %c160], %109 {strides = array<i32>} : memref<2x256xf32, #tpu.memory_space<vmem>>, vector<2x32xf32>,
    %111 = vector.extract_strided_slice %98 {offsets = [12, 0], sizes = [2, 32], strides = [1, 1]} : vector<16x32xf32> to vector<2x32xf32>
    %c0_57 = arith.constant 0 : index
    %c192 = arith.constant 192 : index
    %112 = vector.load %arg24[%c0_57, %c192] : memref<2x256xf32, #tpu.memory_space<vmem>>, vector<2x32xf32>
    tpu.vector_store %arg24[%c0_57, %c192], %111 {strides = array<i32>} : memref<2x256xf32, #tpu.memory_space<vmem>>, vector<2x32xf32>,
    %113 = vector.extract_strided_slice %98 {offsets = [14, 0], sizes = [2, 32], strides = [1, 1]} : vector<16x32xf32> to vector<2x32xf32>
    %c0_58 = arith.constant 0 : index
    %c224 = arith.constant 224 : index
    %114 = vector.load %arg24[%c0_58, %c224] : memref<2x256xf32, #tpu.memory_space<vmem>>, vector<2x32xf32>
    tpu.vector_store %arg24[%c0_58, %c224], %113 {strides = array<i32>} : memref<2x256xf32, #tpu.memory_space<vmem>>, vector<2x32xf32>,
    %c0_59 = arith.constant 0 : index
    %c0_60 = arith.constant 0 : index
    %115 = vector.load %arg24[%c0_59, %c0_60] : memref<2x256xf32, #tpu.memory_space<vmem>>, vector<2x256xf32>
    %c0_61 = arith.constant 0 : index
    %c0_62 = arith.constant 0 : index
    %116 = vector.load %arg9[%c0_61, %c0_62] : memref<256x32xbf16, #tpu.memory_space<vmem>>, vector<256x32xbf16>
    %117 = arith.truncf %115 : vector<2x256xf32> to vector<2x256xbf16>
    %cst_63 = arith.constant dense<0.000000e+00> : vector<2x32xf32>
    %118 = tpu.matmul %117, %116, %cst_63 {dimension_numbers = #tpu.dot_dimension_numbers<[1], [0], [0], [1], [0, 0, 1, 1], [], []>} : vector<2x256xbf16>, vector<256x32xbf16>, vector<2x32xf32> -> vector<2x32xf32>
    %c0_64 = arith.constant 0 : index
    %c0_65 = arith.constant 0 : index
    %119 = vector.load %arg10[%c0_64, %c0_65] : memref<1x32xf32, #tpu.memory_space<vmem>>, vector<1x32xf32>
    %120 = vector.broadcast %119 : vector<1x32xf32> to vector<2x32xf32>
    %121 = arith.addf %118, %120 : vector<2x32xf32>
    %cst_66 = arith.constant 0.000000e+00 : f32
    %122 = vector.broadcast %cst_66 : f32 to vector<2x32xf32>
    %123 = arith.maximumf %121, %122 : vector<2x32xf32>
    %c0_67 = arith.constant 0 : index
    %c0_68 = arith.constant 0 : index
    %124 = vector.load %arg25[%c0_67, %c0_68] : memref<2x32xf32, #tpu.memory_space<vmem>>, vector<2x32xf32>
    tpu.vector_store %arg25[%c0_67, %c0_68], %123 {strides = array<i32>} : memref<2x32xf32, #tpu.memory_space<vmem>>, vector<2x32xf32>,
    %c0_69 = arith.constant 0 : index
    %c0_70 = arith.constant 0 : index
    %125 = vector.load %arg11[%c0_69, %c0_70] : memref<32x256xbf16, #tpu.memory_space<vmem>>, vector<32x256xbf16>
    %126 = arith.truncf %123 : vector<2x32xf32> to vector<2x32xbf16>
    %cst_71 = arith.constant dense<0.000000e+00> : vector<2x256xf32>
    %127 = tpu.matmul %126, %125, %cst_71 {dimension_numbers = #tpu.dot_dimension_numbers<[1], [0], [0], [1], [0, 0, 1, 1], [], []>} : vector<2x32xbf16>, vector<32x256xbf16>, vector<2x256xf32> -> vector<2x256xf32>
    %c0_72 = arith.constant 0 : index
    %c0_73 = arith.constant 0 : index
    %128 = vector.load %arg12[%c0_72, %c0_73] : memref<1x256xf32, #tpu.memory_space<vmem>>, vector<1x256xf32>
    %129 = vector.broadcast %128 : vector<1x256xf32> to vector<2x256xf32>
    %130 = arith.addf %127, %129 : vector<2x256xf32>
    %cst_74 = arith.constant 0.000000e+00 : f32
    %131 = vector.broadcast %cst_74 : f32 to vector<2x256xf32>
    %132 = arith.maximumf %130, %131 : vector<2x256xf32>
    %133 = vector.extract_strided_slice %132 {offsets = [0, 0], sizes = [2, 32], strides = [1, 1]} : vector<2x256xf32> to vector<2x32xf32>
    %134 = vector.extract_strided_slice %132 {offsets = [0, 32], sizes = [2, 32], strides = [1, 1]} : vector<2x256xf32> to vector<2x32xf32>
    %135 = vector.extract_strided_slice %132 {offsets = [0, 64], sizes = [2, 32], strides = [1, 1]} : vector<2x256xf32> to vector<2x32xf32>
    %136 = vector.extract_strided_slice %132 {offsets = [0, 96], sizes = [2, 32], strides = [1, 1]} : vector<2x256xf32> to vector<2x32xf32>
    %137 = vector.extract_strided_slice %132 {offsets = [0, 128], sizes = [2, 32], strides = [1, 1]} : vector<2x256xf32> to vector<2x32xf32>
    %138 = vector.extract_strided_slice %132 {offsets = [0, 160], sizes = [2, 32], strides = [1, 1]} : vector<2x256xf32> to vector<2x32xf32>
    %139 = vector.extract_strided_slice %132 {offsets = [0, 192], sizes = [2, 32], strides = [1, 1]} : vector<2x256xf32> to vector<2x32xf32>
    %140 = vector.extract_strided_slice %132 {offsets = [0, 224], sizes = [2, 32], strides = [1, 1]} : vector<2x256xf32> to vector<2x32xf32>
    %141 = tpu.concatenate %133, %134, %135, %136, %137, %138, %139, %140 in 0 : vector<2x32xf32>, vector<2x32xf32>, vector<2x32xf32>, vector<2x32xf32>, vector<2x32xf32>, vector<2x32xf32>, vector<2x32xf32>, vector<2x32xf32> -> vector<16x32xf32>
    %cst_75 = arith.constant 0.000000e+00 : f32
    %142 = vector.broadcast %cst_75 : f32 to vector<2x32xf32>
    %143 = vector.extract_strided_slice %141 {offsets = [0, 0], sizes = [14, 32], strides = [1, 1]} : vector<16x32xf32> to vector<14x32xf32>
    %144 = tpu.concatenate %142, %143 in 0 : vector<2x32xf32>, vector<14x32xf32> -> vector<16x32xf32>
    %145 = vector.extract_strided_slice %141 {offsets = [2, 0], sizes = [14, 32], strides = [1, 1]} : vector<16x32xf32> to vector<14x32xf32>
    %146 = tpu.concatenate %145, %142 in 0 : vector<14x32xf32>, vector<2x32xf32> -> vector<16x32xf32>
    %c0_76 = arith.constant 0 : index
    %c0_77 = arith.constant 0 : index
    %c0_78 = arith.constant 0 : index
    %147 = vector.load %arg13[%c0_76, %c0_77, %c0_78] : memref<3x32x32xbf16, #tpu.memory_space<vmem>>, vector<1x32x32xbf16>
    %148 = vector.shape_cast %147 : vector<1x32x32xbf16> to vector<32x32xbf16>
    %149 = arith.truncf %144 : vector<16x32xf32> to vector<16x32xbf16>
    %cst_79 = arith.constant dense<0.000000e+00> : vector<16x32xf32>
    %150 = tpu.matmul %149, %148, %cst_79 {dimension_numbers = #tpu.dot_dimension_numbers<[1], [0], [0], [1], [0, 0, 1, 1], [], []>} : vector<16x32xbf16>, vector<32x32xbf16>, vector<16x32xf32> -> vector<16x32xf32>
    %c1_80 = arith.constant 1 : index
    %c0_81 = arith.constant 0 : index
    %c0_82 = arith.constant 0 : index
    %151 = vector.load %arg13[%c1_80, %c0_81, %c0_82] : memref<3x32x32xbf16, #tpu.memory_space<vmem>>, vector<1x32x32xbf16>
    %152 = vector.shape_cast %151 : vector<1x32x32xbf16> to vector<32x32xbf16>
    %153 = arith.truncf %141 : vector<16x32xf32> to vector<16x32xbf16>
    %cst_83 = arith.constant dense<0.000000e+00> : vector<16x32xf32>
    %154 = tpu.matmul %153, %152, %cst_83 {dimension_numbers = #tpu.dot_dimension_numbers<[1], [0], [0], [1], [0, 0, 1, 1], [], []>} : vector<16x32xbf16>, vector<32x32xbf16>, vector<16x32xf32> -> vector<16x32xf32>
    %155 = arith.addf %150, %154 : vector<16x32xf32>
    %c2_84 = arith.constant 2 : index
    %c0_85 = arith.constant 0 : index
    %c0_86 = arith.constant 0 : index
    %156 = vector.load %arg13[%c2_84, %c0_85, %c0_86] : memref<3x32x32xbf16, #tpu.memory_space<vmem>>, vector<1x32x32xbf16>
    %157 = vector.shape_cast %156 : vector<1x32x32xbf16> to vector<32x32xbf16>
    %158 = arith.truncf %146 : vector<16x32xf32> to vector<16x32xbf16>
    %cst_87 = arith.constant dense<0.000000e+00> : vector<16x32xf32>
    %159 = tpu.matmul %158, %157, %cst_87 {dimension_numbers = #tpu.dot_dimension_numbers<[1], [0], [0], [1], [0, 0, 1, 1], [], []>} : vector<16x32xbf16>, vector<32x32xbf16>, vector<16x32xf32> -> vector<16x32xf32>
    %160 = arith.addf %155, %159 : vector<16x32xf32>
    %c0_88 = arith.constant 0 : index
    %c0_89 = arith.constant 0 : index
    %161 = vector.load %arg14[%c0_88, %c0_89] : memref<1x32xf32, #tpu.memory_space<vmem>>, vector<1x32xf32>
    %162 = vector.broadcast %161 : vector<1x32xf32> to vector<16x32xf32>
    %163 = arith.addf %160, %162 : vector<16x32xf32>
    %cst_90 = arith.constant dense<0.000000e+00> : vector<32xf32>
    %164 = vector.multi_reduction <add>, %163, %cst_90 [0] : vector<16x32xf32> to vector<32xf32>
    %165 = vector.shape_cast %164 : vector<32xf32> to vector<1x32xf32>
    %cst_91 = arith.constant 1.600000e+01 : f32
    %166 = vector.broadcast %cst_91 : f32 to vector<1x32xf32>
    %167 = arith.divf %165, %166 : vector<1x32xf32>
    %168 = arith.mulf %163, %163 : vector<16x32xf32>
    %cst_92 = arith.constant dense<0.000000e+00> : vector<32xf32>
    %169 = vector.multi_reduction <add>, %168, %cst_92 [0] : vector<16x32xf32> to vector<32xf32>
    %170 = vector.shape_cast %169 : vector<32xf32> to vector<1x32xf32>
    %cst_93 = arith.constant 1.600000e+01 : f32
    %171 = vector.broadcast %cst_93 : f32 to vector<1x32xf32>
    %172 = arith.divf %170, %171 : vector<1x32xf32>
    %173 = arith.mulf %167, %167 : vector<1x32xf32>
    %174 = arith.subf %172, %173 : vector<1x32xf32>
    %cst_94 = arith.constant 0.000000e+00 : f32
    %175 = vector.broadcast %cst_94 : f32 to vector<1x32xf32>
    %176 = arith.maximumf %174, %175 : vector<1x32xf32>
    %c0_95 = arith.constant 0 : index
    %c0_96 = arith.constant 0 : index
    %177 = vector.load %arg15[%c0_95, %c0_96] : memref<1x32xf32, #tpu.memory_space<vmem>>, vector<1x32xf32>
    %cst_97 = arith.constant 9.99999974E-6 : f32
    %178 = vector.broadcast %cst_97 : f32 to vector<1x32xf32>
    %179 = arith.addf %176, %178 : vector<1x32xf32>
    %180 = math.rsqrt %179 : vector<1x32xf32>
    %181 = arith.mulf %177, %180 : vector<1x32xf32>
    %c0_98 = arith.constant 0 : index
    %c0_99 = arith.constant 0 : index
    %182 = vector.load %arg16[%c0_98, %c0_99] : memref<1x32xf32, #tpu.memory_space<vmem>>, vector<1x32xf32>
    %183 = arith.mulf %167, %181 : vector<1x32xf32>
    %184 = arith.subf %182, %183 : vector<1x32xf32>
    %185 = vector.broadcast %181 : vector<1x32xf32> to vector<16x32xf32>
    %186 = arith.mulf %163, %185 : vector<16x32xf32>
    %187 = vector.broadcast %184 : vector<1x32xf32> to vector<16x32xf32>
    %188 = arith.addf %186, %187 : vector<16x32xf32>
    %cst_100 = arith.constant 0.000000e+00 : f32
    %189 = vector.broadcast %cst_100 : f32 to vector<16x32xf32>
    %190 = arith.maximumf %188, %189 : vector<16x32xf32>
    %cst_101 = arith.constant 0.000000e+00 : f32
    %191 = vector.broadcast %cst_101 : f32 to vector<2x32xf32>
    %192 = vector.extract_strided_slice %190 {offsets = [0, 0], sizes = [14, 32], strides = [1, 1]} : vector<16x32xf32> to vector<14x32xf32>
    %193 = tpu.concatenate %191, %192 in 0 : vector<2x32xf32>, vector<14x32xf32> -> vector<16x32xf32>
    %194 = vector.extract_strided_slice %190 {offsets = [2, 0], sizes = [14, 32], strides = [1, 1]} : vector<16x32xf32> to vector<14x32xf32>
    %195 = tpu.concatenate %194, %191 in 0 : vector<14x32xf32>, vector<2x32xf32> -> vector<16x32xf32>
    %c0_102 = arith.constant 0 : index
    %c0_103 = arith.constant 0 : index
    %c0_104 = arith.constant 0 : index
    %196 = vector.load %arg17[%c0_102, %c0_103, %c0_104] : memref<3x32x32xbf16, #tpu.memory_space<vmem>>, vector<1x32x32xbf16>
    %197 = vector.shape_cast %196 : vector<1x32x32xbf16> to vector<32x32xbf16>
    %198 = arith.truncf %193 : vector<16x32xf32> to vector<16x32xbf16>
    %cst_105 = arith.constant dense<0.000000e+00> : vector<16x32xf32>
    %199 = tpu.matmul %198, %197, %cst_105 {dimension_numbers = #tpu.dot_dimension_numbers<[1], [0], [0], [1], [0, 0, 1, 1], [], []>} : vector<16x32xbf16>, vector<32x32xbf16>, vector<16x32xf32> -> vector<16x32xf32>
    %c1_106 = arith.constant 1 : index
    %c0_107 = arith.constant 0 : index
    %c0_108 = arith.constant 0 : index
    %200 = vector.load %arg17[%c1_106, %c0_107, %c0_108] : memref<3x32x32xbf16, #tpu.memory_space<vmem>>, vector<1x32x32xbf16>
    %201 = vector.shape_cast %200 : vector<1x32x32xbf16> to vector<32x32xbf16>
    %202 = arith.truncf %190 : vector<16x32xf32> to vector<16x32xbf16>
    %cst_109 = arith.constant dense<0.000000e+00> : vector<16x32xf32>
    %203 = tpu.matmul %202, %201, %cst_109 {dimension_numbers = #tpu.dot_dimension_numbers<[1], [0], [0], [1], [0, 0, 1, 1], [], []>} : vector<16x32xbf16>, vector<32x32xbf16>, vector<16x32xf32> -> vector<16x32xf32>
    %204 = arith.addf %199, %203 : vector<16x32xf32>
    %c2_110 = arith.constant 2 : index
    %c0_111 = arith.constant 0 : index
    %c0_112 = arith.constant 0 : index
    %205 = vector.load %arg17[%c2_110, %c0_111, %c0_112] : memref<3x32x32xbf16, #tpu.memory_space<vmem>>, vector<1x32x32xbf16>
    %206 = vector.shape_cast %205 : vector<1x32x32xbf16> to vector<32x32xbf16>
    %207 = arith.truncf %195 : vector<16x32xf32> to vector<16x32xbf16>
    %cst_113 = arith.constant dense<0.000000e+00> : vector<16x32xf32>
    %208 = tpu.matmul %207, %206, %cst_113 {dimension_numbers = #tpu.dot_dimension_numbers<[1], [0], [0], [1], [0, 0, 1, 1], [], []>} : vector<16x32xbf16>, vector<32x32xbf16>, vector<16x32xf32> -> vector<16x32xf32>
    %209 = arith.addf %204, %208 : vector<16x32xf32>
    %c0_114 = arith.constant 0 : index
    %c0_115 = arith.constant 0 : index
    %210 = vector.load %arg18[%c0_114, %c0_115] : memref<1x32xf32, #tpu.memory_space<vmem>>, vector<1x32xf32>
    %211 = vector.broadcast %210 : vector<1x32xf32> to vector<16x32xf32>
    %212 = arith.addf %209, %211 : vector<16x32xf32>
    %cst_116 = arith.constant dense<0.000000e+00> : vector<32xf32>
    %213 = vector.multi_reduction <add>, %212, %cst_116 [0] : vector<16x32xf32> to vector<32xf32>
    %214 = vector.shape_cast %213 : vector<32xf32> to vector<1x32xf32>
    %cst_117 = arith.constant 1.600000e+01 : f32
    %215 = vector.broadcast %cst_117 : f32 to vector<1x32xf32>
    %216 = arith.divf %214, %215 : vector<1x32xf32>
    %217 = arith.mulf %212, %212 : vector<16x32xf32>
    %cst_118 = arith.constant dense<0.000000e+00> : vector<32xf32>
    %218 = vector.multi_reduction <add>, %217, %cst_118 [0] : vector<16x32xf32> to vector<32xf32>
    %219 = vector.shape_cast %218 : vector<32xf32> to vector<1x32xf32>
    %cst_119 = arith.constant 1.600000e+01 : f32
    %220 = vector.broadcast %cst_119 : f32 to vector<1x32xf32>
    %221 = arith.divf %219, %220 : vector<1x32xf32>
    %222 = arith.mulf %216, %216 : vector<1x32xf32>
    %223 = arith.subf %221, %222 : vector<1x32xf32>
    %cst_120 = arith.constant 0.000000e+00 : f32
    %224 = vector.broadcast %cst_120 : f32 to vector<1x32xf32>
    %225 = arith.maximumf %223, %224 : vector<1x32xf32>
    %c0_121 = arith.constant 0 : index
    %c0_122 = arith.constant 0 : index
    %226 = vector.load %arg19[%c0_121, %c0_122] : memref<1x32xf32, #tpu.memory_space<vmem>>, vector<1x32xf32>
    %cst_123 = arith.constant 9.99999974E-6 : f32
    %227 = vector.broadcast %cst_123 : f32 to vector<1x32xf32>
    %228 = arith.addf %225, %227 : vector<1x32xf32>
    %229 = math.rsqrt %228 : vector<1x32xf32>
    %230 = arith.mulf %226, %229 : vector<1x32xf32>
    %c0_124 = arith.constant 0 : index
    %c0_125 = arith.constant 0 : index
    %231 = vector.load %arg20[%c0_124, %c0_125] : memref<1x32xf32, #tpu.memory_space<vmem>>, vector<1x32xf32>
    %232 = arith.mulf %216, %230 : vector<1x32xf32>
    %233 = arith.subf %231, %232 : vector<1x32xf32>
    %234 = vector.broadcast %230 : vector<1x32xf32> to vector<16x32xf32>
    %235 = arith.mulf %212, %234 : vector<16x32xf32>
    %236 = vector.broadcast %233 : vector<1x32xf32> to vector<16x32xf32>
    %237 = arith.addf %235, %236 : vector<16x32xf32>
    %cst_126 = arith.constant 0.000000e+00 : f32
    %238 = vector.broadcast %cst_126 : f32 to vector<16x32xf32>
    %239 = arith.maximumf %237, %238 : vector<16x32xf32>
    %c0_127 = arith.constant 0 : index
    %c0_128 = arith.constant 0 : index
    %240 = vector.load %arg21[%c0_127, %c0_128] : memref<32x16xbf16, #tpu.memory_space<vmem>>, vector<32x16xbf16>
    %241 = arith.truncf %239 : vector<16x32xf32> to vector<16x32xbf16>
    %cst_129 = arith.constant dense<0.000000e+00> : vector<16x16xf32>
    %242 = tpu.matmul %241, %240, %cst_129 {dimension_numbers = #tpu.dot_dimension_numbers<[1], [0], [0], [1], [0, 0, 1, 1], [], []>} : vector<16x32xbf16>, vector<32x16xbf16>, vector<16x16xf32> -> vector<16x16xf32>
    %c0_130 = arith.constant 0 : index
    %c0_131 = arith.constant 0 : index
    %243 = vector.load %arg22[%c0_130, %c0_131] : memref<1x16xf32, #tpu.memory_space<vmem>>, vector<1x16xf32>
    %244 = vector.broadcast %243 : vector<1x16xf32> to vector<16x16xf32>
    %245 = arith.addf %242, %244 : vector<16x16xf32>
    %246 = vector.extract_strided_slice %245 {offsets = [0, 0], sizes = [2, 16], strides = [1, 1]} : vector<16x16xf32> to vector<2x16xf32>
    %c0_132 = arith.constant 0 : index
    %c0_133 = arith.constant 0 : index
    %247 = vector.load %arg23[%c0_132, %c0_133] : memref<2x128xf32, #tpu.memory_space<vmem>>, vector<2x16xf32>
    tpu.vector_store %arg23[%c0_132, %c0_133], %246 {strides = array<i32>} : memref<2x128xf32, #tpu.memory_space<vmem>>, vector<2x16xf32>,
    %248 = vector.extract_strided_slice %245 {offsets = [2, 0], sizes = [2, 16], strides = [1, 1]} : vector<16x16xf32> to vector<2x16xf32>
    %c0_134 = arith.constant 0 : index
    %c16 = arith.constant 16 : index
    %249 = vector.load %arg23[%c0_134, %c16] : memref<2x128xf32, #tpu.memory_space<vmem>>, vector<2x16xf32>
    tpu.vector_store %arg23[%c0_134, %c16], %248 {strides = array<i32>} : memref<2x128xf32, #tpu.memory_space<vmem>>, vector<2x16xf32>,
    %250 = vector.extract_strided_slice %245 {offsets = [4, 0], sizes = [2, 16], strides = [1, 1]} : vector<16x16xf32> to vector<2x16xf32>
    %c0_135 = arith.constant 0 : index
    %c32_136 = arith.constant 32 : index
    %251 = vector.load %arg23[%c0_135, %c32_136] : memref<2x128xf32, #tpu.memory_space<vmem>>, vector<2x16xf32>
    tpu.vector_store %arg23[%c0_135, %c32_136], %250 {strides = array<i32>} : memref<2x128xf32, #tpu.memory_space<vmem>>, vector<2x16xf32>,
    %252 = vector.extract_strided_slice %245 {offsets = [6, 0], sizes = [2, 16], strides = [1, 1]} : vector<16x16xf32> to vector<2x16xf32>
    %c0_137 = arith.constant 0 : index
    %c48 = arith.constant 48 : index
    %253 = vector.load %arg23[%c0_137, %c48] : memref<2x128xf32, #tpu.memory_space<vmem>>, vector<2x16xf32>
    tpu.vector_store %arg23[%c0_137, %c48], %252 {strides = array<i32>} : memref<2x128xf32, #tpu.memory_space<vmem>>, vector<2x16xf32>,
    %254 = vector.extract_strided_slice %245 {offsets = [8, 0], sizes = [2, 16], strides = [1, 1]} : vector<16x16xf32> to vector<2x16xf32>
    %c0_138 = arith.constant 0 : index
    %c64_139 = arith.constant 64 : index
    %255 = vector.load %arg23[%c0_138, %c64_139] : memref<2x128xf32, #tpu.memory_space<vmem>>, vector<2x16xf32>
    tpu.vector_store %arg23[%c0_138, %c64_139], %254 {strides = array<i32>} : memref<2x128xf32, #tpu.memory_space<vmem>>, vector<2x16xf32>,
    %256 = vector.extract_strided_slice %245 {offsets = [10, 0], sizes = [2, 16], strides = [1, 1]} : vector<16x16xf32> to vector<2x16xf32>
    %c0_140 = arith.constant 0 : index
    %c80 = arith.constant 80 : index
    %257 = vector.load %arg23[%c0_140, %c80] : memref<2x128xf32, #tpu.memory_space<vmem>>, vector<2x16xf32>
    tpu.vector_store %arg23[%c0_140, %c80], %256 {strides = array<i32>} : memref<2x128xf32, #tpu.memory_space<vmem>>, vector<2x16xf32>,
    %258 = vector.extract_strided_slice %245 {offsets = [12, 0], sizes = [2, 16], strides = [1, 1]} : vector<16x16xf32> to vector<2x16xf32>
    %c0_141 = arith.constant 0 : index
    %c96_142 = arith.constant 96 : index
    %259 = vector.load %arg23[%c0_141, %c96_142] : memref<2x128xf32, #tpu.memory_space<vmem>>, vector<2x16xf32>
    tpu.vector_store %arg23[%c0_141, %c96_142], %258 {strides = array<i32>} : memref<2x128xf32, #tpu.memory_space<vmem>>, vector<2x16xf32>,
    %260 = vector.extract_strided_slice %245 {offsets = [14, 0], sizes = [2, 16], strides = [1, 1]} : vector<16x16xf32> to vector<2x16xf32>
    %c0_143 = arith.constant 0 : index
    %c112 = arith.constant 112 : index
    %261 = vector.load %arg23[%c0_143, %c112] : memref<2x128xf32, #tpu.memory_space<vmem>>, vector<2x16xf32>
    tpu.vector_store %arg23[%c0_143, %c112], %260 {strides = array<i32>} : memref<2x128xf32, #tpu.memory_space<vmem>>, vector<2x16xf32>,
    return
  }
}

</mosaic_0001>

<bundles_post_ra>
// kernel: autoencoder_forward.1
= control target key start
LH: loop header
LB: loop body
LE: loop exit
PB: predicated region body
PF: predicated region fallthrough
CT: control target
= control target key end

     0   :  { %s2456_s0 = inlined_call_operand.vmem [shape: f32[16,8], index: 0, kind: input, shape index: {}]   ;;  %s2457_s1 = inlined_call_operand.vmem [shape: bf16[3,8,32], index: 1, kind: input, shape index: {}]   ;;  %s2458_s2 = inlined_call_operand.vmem [shape: f32[1,32], index: 2, kind: input, shape index: {}]   ;;  %s2459_s3 = inlined_call_operand.vmem [shape: f32[1,32], index: 3, kind: input, shape index: {}]   ;;  %s2460_s4 = inlined_call_operand.vmem [shape: f32[1,32], index: 4, kind: input, shape index: {}]   ;;  %s2461_s5 = inlined_call_operand.vmem [shape: bf16[3,32,32], index: 5, kind: input, shape index: {}]   ;;  %s2462_s6 = inlined_call_operand.vmem [shape: f32[1,32], index: 6, kind: input, shape index: {}]   ;;  %s2463_s7 = inlined_call_operand.vmem [shape: f32[1,32], index: 7, kind: input, shape index: {}]   ;;  %s2464_s8 = inlined_call_operand.vmem [shape: f32[1,32], index: 8, kind: input, shape index: {}]   ;;  %s2465_s9 = inlined_call_operand.vmem [shape: bf16[256,32], index: 9, kind: input, shape index: {}]   ;;  %s2466_s10 = inlined_call_operand.vmem [shape: f32[1,32], index: 10, kind: input, shape index: {}]   ;;  %s2467_s11 = inlined_call_operand.vmem [shape: bf16[32,256], index: 11, kind: input, shape index: {}]   ;;  %s2468_s12 = inlined_call_operand.vmem [shape: f32[1,256], index: 12, kind: input, shape index: {}]   ;;  %s2469_s13 = inlined_call_operand.vmem [shape: bf16[3,32,32], index: 13, kind: input, shape index: {}]   ;;  %s2470_s14 = inlined_call_operand.vmem [shape: f32[1,32], index: 14, kind: input, shape index: {}]   ;;  %s2471_s15 = inlined_call_operand.vmem [shape: f32[1,32], index: 15, kind: input, shape index: {}]   ;;  %s2472_s16 = inlined_call_operand.vmem [shape: f32[1,32], index: 16, kind: input, shape index: {}]   ;;  %s2473_s17 = inlined_call_operand.vmem [shape: bf16[3,32,32], index: 17, kind: input, shape index: {}]   ;;  %s2474_s18 = inlined_call_operand.vmem [shape: f32[1,32], index: 18, kind: input, shape index: {}]   ;;  %s2475_s19 = inlined_call_operand.vmem [shape: f32[1,32], index: 19, kind: input, shape index: {}]   ;;  %s2476_s20 = inlined_call_operand.vmem [shape: f32[1,32], index: 20, kind: input, shape index: {}]   ;;  %s2477_s21 = inlined_call_operand.vmem [shape: bf16[32,16], index: 21, kind: input, shape index: {}]   ;;  %s2478_s22 = inlined_call_operand.vmem [shape: f32[1,16], index: 22, kind: input, shape index: {}]   ;;  %s2479_s23 = inlined_call_operand.vmem [shape: f32[2,128], index: 23, kind: output, shape index: {0}]   ;;  %s2480_s24 = inlined_call_operand.vmem [shape: f32[2,256], index: 24, kind: output, shape index: {1}]   ;;  %s2481_s25 = inlined_call_operand.hbm [shape: f32[2,32], index: 25, kind: output, shape index: {2}]  }
   0x1   :  { %2486 = sst [smem:[#allocation5_spill]] %s2456_s0 }
   0x2   :  { %2487 = sst [smem:[#allocation6_spill]] %s2457_s1 }
   0x3   :  { %2488 = sst [smem:[#allocation7_spill]] %s2458_s2 }
   0x4   :  { %2489 = sst [smem:[#allocation8_spill]] %s2459_s3 }
   0x5   :  { %2490 = sst [smem:[#allocation9_spill]] %s2460_s4 }
   0x6   :  { %2491 = sst [smem:[#allocation10_spill]] %s2461_s5 }
   0x7   :  { %2492 = sst [smem:[#allocation11_spill]] %s2462_s6 }
   0x8   :  { %2493 = sst [smem:[#allocation12_spill]] %s2463_s7 }
   0x9   :  { %2494 = sst [smem:[#allocation13_spill]] %s2464_s8 }
   0xa   :  { %2495 = sst [smem:[#allocation14_spill]] %s2465_s9 }
   0xb   :  { %s2496_s6 = sld [smem:[#allocation6_spill]]  ;;  %vm106_vm0 = vcmask 1043456   ;;  %v1936_v2 = vmov 0.0   ;;  %s2497_s1 = sld [smem:[#allocation5_spill]]  ;;  %vm102_vm1 = vcmask 64512   ;;  %vm1937_vm2 = vmmov 0  }
   0xc   :  { %1737 = vmatprep.subr.bf16.mxu0 %v1936_v2  ;;  %1743 = vmatprep.subr.bf16.mxu1 %v1936_v2  ;;  %vm83_vm3 = vcmask 1041408   ;;  %vm90_vm4 = vcmask 1045504  }
   0xd   :  { %1739 = vmatprep.mubr.msk.bf16.mxu0 %vm1937_vm2, %v1936_v2  ;;  %1745 = vmatprep.mubr.msk.bf16.mxu1 %vm1937_vm2, %v1936_v2 }
  0x11   :  { %v1592_v0 = vld [vmem:[%s2496_s6 + $0x4] sm:$0xf]  ;;  %v97_v1 = vld [vmem:[%s2496_s6] sm:$0xf]  ;;  %v80_v6 = vld [vmem:[%s2497_s1 + $0x8] sm:$0xff] }
  0x12   :  { %v108_v3 = vsel %vm106_vm0, %v1592_v0, 0  ;;  %v155_v4 = vsel %vm106_vm0, %v97_v1, 0  ;;  %v79_v5 = vld [vmem:[%s2497_s1] sm:$0xff]  ;;  %v85_v7 = vrot.slane %v80_v6, 6  ;;  %v92_v9 = vrot.slane %v80_v6, 2 }
  0x13   :  { %1738 = vmatpush3.bf16.msra.mxu0 %v108_v3  ;;  %1744 = vmatpush3.bf16.msra.mxu1 %v155_v4  ;;  %v91_v8 = vrot.slane %v79_v5, 2  ;;  %v101_v10 = vpack.c.bf16 %v80_v6, %v79_v5  ;;  %v1595_v11 = vld [vmem:[%s2496_s6 + $0x8] sm:$0xf]  ;;  %v84_v12 = vrot.slane %v79_v5, 6 }
  0x14   :  { %v205_v13 = vsel %vm106_vm0, %v1595_v11, 0  ;;  %1749 = vmatprep.subr.bf16.mxu0 %v1936_v2  ;;  %v96_v14 = vsel %vm90_vm4, %v92_v9, 0.0  ;;  %1755 = vmatprep.subr.bf16.mxu1 %v1936_v2 }
  0x15   :  { %v86_v15 = vsel %vm83_vm3, %v84_v12, %v85_v7  ;;  %v89_v16 = vsel %vm83_vm3, 0.0, %v84_v12  ;;  %v93_v18 = vsel %vm90_vm4, %v91_v8, %v92_v9 }
  0x16   :  { %1740 = vmatmul.mubr.msk.bf16.vlgmr.msra.gmra.mrb[0].mxu0 %vm102_vm1, %v101_v10  ;;  %v98_v17 = vpack.c.bf16 %v86_v15, %v89_v16  ;;  %v200_v19 = vpack.c.bf16 %v96_v14, %v93_v18 }
  0x17   :  { %1750 = vmatpush3.bf16.msra.mxu0 %v205_v13  ;;  %1751 = vmatprep.mubr.msk.bf16.mxu0 %vm1937_vm2, %v1936_v2 }
  0x18   :  { %1763 = vmatprep.subr.bf16.mxu0 %v1936_v2  ;;  %1746 = vmatmul.mubr.msk.bf16.vlgmr.msra.gmra.mrb[0].mxu1 %vm102_vm1, %v98_v17 }
  0x19   :  { %1759 = vmatprep.mubr.msk.bf16.mxu1 %vm1937_vm2, %v1936_v2 }
  0x1e   :  { %1752 = vmatmul.mubr.msk.bf16.vlgmr.msra.gmra.mrb[4].mxu0 %vm102_vm1, %v200_v19 }
  0x1f   :  { %1767 = vmatprep.mubr.msk.bf16.mxu0 %vm1937_vm2, %v1936_v2 }
  0x20   :  { %31 = vsyncpa [#allocation3], 0  ;;  %s2498_s0 = sld [smem:[#allocation10_spill]]  ;;  %s2499_s8 = sld [smem:[#allocation7_spill]]  ;;  %vm259_vm5 = vcmask 261120   ;;  %v294_v6 = vlaneseq  ;;  %vm571_vm6 = vcmask 254976  }
  0x21   :  { %s2500_s28 = sld [smem:[#allocation8_spill]]  ;;  %s2501_s29 = sld [smem:[#allocation9_spill]]  ;;  %vm585_vm7 = vcmask 517376   ;;  %vm598_vm8 = vcmask 779776   ;;  %vm604_vm9 = vcmask 1042176   ;;  %vm1531_vm10 = vcmask 123904  }
  0x22   :  { %v2140_v7 = vshrl.u32 %v294_v6, 7  ;;  %s2502_s1 = sld [smem:[#allocation14_spill]]  ;;  %s2503_s3 = sld [smem:[#allocation11_spill]] }
  0x23   :  { %s2504_s27 = sld [smem:[#allocation12_spill]]  ;;  %s1939_s26 = smov 64  }
  0x24   :  { %v2146_v9 = vsub.s32 0, %v2140_v7  ;;  %s1941_s4 = smov 96  }
  0x26   :  { %v1862_v20 = vld [vmem:[%s2498_s0 + $0x10] sm:$0xff]   ;;  %v1863_v21 = vld [vmem:[%s2498_s0] sm:$0xff]   ;;  %v1864_v22 = vld [vmem:[%s2498_s0 + $0x18] sm:$0xff]  }
  0x27   :  { %1756 = vmatpush3.bf16.msra.mxu1 %v1862_v20  ;;  %1764 = vmatpush3.bf16.msra.mxu0 %v1863_v21  ;;  %v1865_v23 = vld [vmem:[%s2498_s0 + $0x8] sm:$0xff]   ;;  %v1597_v35 = vld [vmem:[%s2499_s8] ss:$0 sm:$0xff]  ;;  %s1940_s8 = smov 32  }
  0x28   :  { %1757 = vmatprep.subr.bf16.mxu1 %v1936_v2  ;;  %1765 = vmatprep.subr.bf16.mxu0 %v1936_v2  ;;  %v286_v8 = vld [vmem:[%s2500_s28] sm:$0x1]  ;;  %s2505_s28 = sld [smem:[#allocation13_spill]] }
  0x29   :  { %v290_v12 = vld [vmem:[%s2501_s29] sm:$0x1] }
  0x2b   :  { %1758 = vmatpush3.bf16.msra.mxu1 %v1864_v22  ;;  %1766 = vmatpush3.bf16.msra.mxu0 %v1865_v23  ;;  %v1866_v23 = vld [vmem:[%s2498_s0 + $0x20] sm:$0xff]  }
  0x2c   :  { %1771 = vmatprep.subr.bf16.mxu1 %v1936_v2 }
  0xe9   :  { %v144_v24 = vpop.f32.mrb[0].mxu0 }
  0xea   :  { %v1741_v25 = vpop.f32.mrb[1].mxu0 }
  0xeb   :  { %v147_v26 = vpop.f32.mrb[2].mxu0  ;;  %v191_v27 = vpop.f32.mrb[0].mxu1 }
  0xec   :  { %v1742_v28 = vpop.f32.mrb[3].mxu0  ;;  %v192_v29 = vadd.f32 %v191_v27, %v144_v24  ;;  %v1747_v30 = vpop.f32.mrb[1].mxu1 }
  0xed   :  { %v194_v31 = vpop.f32.mrb[2].mxu1 }
  0xee   :  { %v195_v32 = vadd.f32 %v194_v31, %v147_v26  ;;  %v1748_v33 = vpop.f32.mrb[3].mxu1 }
  0xef   :  { %v1867_v33 = vld [vmem:[%s2498_s0 + $0x28] sm:$0xff]  }
  0xf1   :  { %v241_v34 = vpop.f32.mrb[4].mxu0 }
  0xf2   :  { %v248_v36 = vadd.f32 %v241_v34, %v192_v29  ;;  %v1753_v37 = vpop.f32.mrb[5].mxu0 }
  0xf3   :  { %v244_v38 = vpop.f32.mrb[6].mxu0  ;;  %v1869_v37 = vld [vmem:[%s2502_s1] sm:$0xff]  }
  0xf4   :  { %v257_v39 = vadd.f32 %v1597_v35, %v248_v36  ;;  %v249_v40 = vadd.f32 %v244_v38, %v195_v32  ;;  %v1754_v41 = vpop.f32.mrb[7].mxu0  ;;  %v1868_v36 = vld [vmem:[%s2502_s1 + $0x40] sm:$0xff]   ;;  %v1870_v38 = vld [vmem:[%s2502_s1 + $0x48] sm:$0xff]  }
  0xf5   :  { %1694 = vmatprep.subr.bf16.mxu0 %v1868_v36  ;;  %v1873_v41 = vld [vmem:[%s2502_s1 + $0x10] sm:$0xff]  }
  0xf6   :  { %v271_v42 = vmul.f32 %v257_v39, %v257_v39  ;;  %v258_v43 = vadd.f32 %v1597_v35, %v249_v40  ;;  %v260_v44 = vsel %vm259_vm5, %v257_v39, 0.0  ;;  %v1872_v40 = vld [vmem:[%s2502_s1 + $0x50] sm:$0xff]  }
  0xf8   :  { %v261_v45 = vsel %vm259_vm5, %v258_v43, 0.0  ;;  %v272_v46 = vmul.f32 %v258_v43, %v258_v43  ;;  %v273_v48 = vsel %vm259_vm5, %v271_v42, 0.0 }
  0xf9   :  { %v262_v47 = vadd.f32 %v261_v45, %v260_v44 }
  0xfa   :  { %v274_v49 = vsel %vm259_vm5, %v272_v46, 0.0 }
  0xfb   :  { %v263_v50 = vrot.slane %v262_v47, 4  ;;  %v275_v51 = vadd.f32 %v274_v49, %v273_v48 }
  0xfd   :  { %v264_v52 = vadd.f32 %v263_v50, %v262_v47  ;;  %v276_v53 = vrot.slane %v275_v51, 4 }
  0xff   :  { %v265_v54 = vrot.slane %v264_v52, 2  ;;  %v277_v55 = vadd.f32 %v276_v53, %v275_v51  ;;  %v1615_v53 = vld [vmem:[%s2503_s3] ss:$0 sm:$0xff] }
 0x101   :  { %v266_v56 = vadd.f32 %v265_v54, %v264_v52  ;;  %v278_v57 = vrot.slane %v277_v55, 2 }
 0x103   :  { %v267_v58 = vrot.slane %v266_v56, 1  ;;  %v279_v59 = vadd.f32 %v278_v57, %v277_v55 }
 0x105   :  { %v268_v60 = vadd.f32 %v267_v58, %v266_v56  ;;  %v280_v61 = vrot.slane %v279_v59, 1 }
 0x107   :  { %v270_v62 = vmul.f32 0.0625, %v268_v60  ;;  %v281_v63 = vadd.f32 %v280_v61, %v279_v59 }
 0x109   :  { %v282_v0 = vmul.f32 0.0625, %v281_v63  ;;  %v283_v1 = vmul.f32 %v270_v62, %v270_v62 }
 0x10b   :  { %v284_v3 = vsub.f32 %v282_v0, %v283_v1 }
 0x10d   :  { %v285_v4 = vmax.f32 %v284_v3, 0.0 }
 0x10f   :  { %v287_v5 = vadd.f32 1e-05, %v285_v4 }
 0x111   :  { %1904 = vrsqrt.f32 %v287_v5 }
 0x11b   :  { %v1905_v10 = vpop.eup %1904 }
 0x11c   :  { %v289_v11 = vmul.f32 %v1905_v10, %v286_v8 }
 0x11e   :  { %v291_v13 = vmul.f32 %v289_v11, %v270_v62  ;;  %v297_v14 = vrot.slane %v289_v11, %v2146_v9 }
 0x120   :  { %v292_v15 = vsub.f32 %v290_v12, %v291_v13  ;;  %v299_v16 = vmul.f32 %v297_v14, %v257_v39  ;;  %v300_v17 = vmul.f32 %v297_v14, %v258_v43  ;;  %v1871_v39 = vld [vmem:[%s2502_s1 + $0x8] sm:$0xff]  }
 0x122   :  { %v305_v18 = vrot.slane %v292_v15, %v2146_v9 }
 0x124   :  { %v307_v19 = vadd.f32 %v305_v18, %v299_v16  ;;  %v308_v20 = vadd.f32 %v305_v18, %v300_v17 }
 0x126   :  { %v309_v21 = vmax.f32 %v307_v19, 0.0  ;;  %v310_v22 = vmax.f32 %v308_v20, 0.0 }
 0x128   :  { %v314_v24 = vrot.slane %v310_v22, 6  ;;  %v320_v25 = vrot.slane %v310_v22, 2  ;;  %v335_v26 = vpack.c.bf16 %v310_v22, %v309_v21  ;;  %v313_v27 = vrot.slane %v309_v21, 6 }
 0x129   :  { %v319_v28 = vrot.slane %v309_v21, 2 }
 0x12a   :  { %1760 = vmatmul.mubr.msk.bf16.vlgmr.msra.gmra.mrb[4].mxu1 %vm259_vm5, %v335_v26  ;;  %v315_v29 = vsel %vm83_vm3, %v313_v27, %v314_v24  ;;  %v318_v30 = vsel %vm83_vm3, 0.0, %v313_v27  ;;  %v324_v31 = vsel %vm90_vm4, %v320_v25, 0.0  ;;  %v546_v26 = vld [vmem:[%s2504_s27] sm:$0x1] }
 0x12b   :  { %1772 = vmatpush3.bf16.msra.mxu1 %v1866_v23  ;;  %v329_v32 = vpack.c.bf16 %v315_v29, %v318_v30  ;;  %1775 = vmatprep.mubr.msk.bf16.mxu1 %vm1937_vm2, %v1936_v2  ;;  %v321_v34 = vsel %vm90_vm4, %v319_v28, %v320_v25  ;;  %v1938_v29 = vmov 1983009808  }
 0x12c   :  { %1773 = vmatprep.subr.bf16.mxu1 %v1936_v2  ;;  %v453_v35 = vpack.c.bf16 %v324_v31, %v321_v34  ;;  %v575_v30 = vunpack.c.l.s4 %v1938_v29  ;;  %v550_v31 = vld [vmem:[%s2505_s28] sm:$0x1]  ;;  %v1874_v34 = vld [vmem:[%s2502_s1 + $0x58] sm:$0xff]  }
 0x12d   :  { %1768 = vmatmul.mubr.msk.bf16.vlgmr.msra.gmra.mrb[8].mxu0 %vm259_vm5, %v329_v32 }
 0x12e   :  { %1695 = vmatpush3.bf16.msra.mxu0 %v1869_v37 }
 0x12f   :  { %1774 = vmatpush3.bf16.msra.mxu1 %v1867_v33  ;;  %1696 = vmatprep.subr.bf16.mxu0 %v1870_v38 }
 0x132   :  { %1776 = vmatmul.mubr.msk.bf16.vlgmr.msra.gmra.mrb[8].mxu1 %vm259_vm5, %v453_v35  ;;  %1697 = vmatpush3.bf16.msra.mxu0 %v1871_v39  ;;  %v1875_v35 = vld [vmem:[%s2502_s1 + $0x18] sm:$0xff]   ;;  %v576_v39 = vunpack.c.0.s8 %v575_v30 }
 0x133   :  { %1698 = vmatprep.subr.bf16.mxu0 %v1872_v40 }
 0x136   :  { %1699 = vmatpush3.bf16.msra.mxu0 %v1873_v41  ;;  %v1876_v41 = vld [vmem:[%s2502_s1 + $0x60] sm:$0xff]  }
 0x137   :  { %1700 = vmatprep.subr.bf16.mxu0 %v1874_v34 }
 0x13a   :  { %1701 = vmatpush3.bf16.msra.mxu0 %v1875_v35 }
 0x13b   :  { %1702 = vmatprep.subr.bf16.mxu0 %v1876_v41 }
 0x1fd   :  { %v385_v42 = vpop.f32.mrb[4].mxu1 }
 0x1fe   :  { %v1761_v43 = vpop.f32.mrb[5].mxu1 }
 0x1ff   :  { %v388_v44 = vpop.f32.mrb[6].mxu1 }
 0x200   :  { %v1762_v45 = vpop.f32.mrb[7].mxu1  ;;  %v441_v46 = vpop.f32.mrb[8].mxu0 }
 0x201   :  { %v442_v47 = vadd.f32 %v441_v46, %v385_v42  ;;  %v1769_v48 = vpop.f32.mrb[9].mxu0  ;;  %v1877_v42 = vld [vmem:[%s2502_s1 + $0x20] sm:$0xff]   ;;  %v579_v45 = vsub.s32 %v576_v39, %v2140_v7 }
 0x202   :  { %v444_v49 = vpop.f32.mrb[10].mxu0  ;;  %1703 = vmatpush3.bf16.msra.mxu0 %v1877_v42  ;;  %v1878_v48 = vld [vmem:[%s2502_s1 + $0x68] sm:$0xff]  }
 0x203   :  { %v445_v50 = vadd.f32 %v444_v49, %v388_v44  ;;  %v1770_v51 = vpop.f32.mrb[11].mxu0  ;;  %v1879_v49 = vld [vmem:[%s2502_s1 + $0x28] sm:$0xff]   ;;  %1704 = vmatprep.subr.bf16.mxu0 %v1878_v48 }
 0x205   :  { %v503_v52 = vpop.f32.mrb[8].mxu1 }
 0x206   :  { %v510_v54 = vadd.f32 %v503_v52, %v442_v47  ;;  %v1777_v55 = vpop.f32.mrb[9].mxu1  ;;  %1705 = vmatpush3.bf16.msra.mxu0 %v1879_v49 }
 0x207   :  { %v506_v56 = vpop.f32.mrb[10].mxu1 }
 0x208   :  { %v519_v57 = vadd.f32 %v1615_v53, %v510_v54  ;;  %v511_v58 = vadd.f32 %v506_v56, %v445_v50  ;;  %v1778_v59 = vpop.f32.mrb[11].mxu1  ;;  %v1880_v50 = vld [vmem:[%s2502_s1 + $0x70] sm:$0xff]  }
 0x209   :  { %1706 = vmatprep.subr.bf16.mxu0 %v1880_v50 }
 0x20a   :  { %v531_v60 = vmul.f32 %v519_v57, %v519_v57  ;;  %v520_v61 = vadd.f32 %v1615_v53, %v511_v58  ;;  %v521_v62 = vsel %vm259_vm5, %v519_v57, 0.0  ;;  %v1882_v58 = vld [vmem:[%s2502_s1 + $0x78] sm:$0xff]  }
 0x20c   :  { %v522_v63 = vsel %vm259_vm5, %v520_v61, 0.0  ;;  %v532_v0 = vmul.f32 %v520_v61, %v520_v61  ;;  %v533_v3 = vsel %vm259_vm5, %v531_v60, 0.0 }
 0x20d   :  { %v523_v1 = vadd.f32 %v522_v63, %v521_v62 }
 0x20e   :  { %v534_v4 = vsel %vm259_vm5, %v532_v0, 0.0 }
 0x20f   :  { %v524_v5 = vrot.slane %v523_v1, 4  ;;  %v535_v6 = vadd.f32 %v534_v4, %v533_v3 }
 0x211   :  { %v525_v8 = vadd.f32 %v524_v5, %v523_v1  ;;  %v536_v10 = vrot.slane %v535_v6, 4 }
 0x213   :  { %v526_v11 = vrot.slane %v525_v8, 2  ;;  %v537_v12 = vadd.f32 %v536_v10, %v535_v6 }
 0x215   :  { %v527_v13 = vadd.f32 %v526_v11, %v525_v8  ;;  %v538_v14 = vrot.slane %v537_v12, 2 }
 0x217   :  { %v528_v15 = vrot.slane %v527_v13, 1  ;;  %v539_v16 = vadd.f32 %v538_v14, %v537_v12  ;;  %v1884_v14 = vld [vmem:[%s2467_s11] ss:$8 sps:$4 sm:$0xff]  }
 0x219   :  { %v529_v17 = vadd.f32 %v528_v15, %v527_v13  ;;  %v540_v18 = vrot.slane %v539_v16, 1  ;;  %v1886_v13 = vld [vmem:[%s2467_s11 + $0x4] ss:$8 sps:$4 sm:$0xff]   ;;  %v1889_v15 = vld [vmem:[%s2467_s11 + $0x14] ss:$8 sps:$4 sm:$0xff]  }
 0x21a   :  { %868 = vmatprep.subr.bf16.mxu1 %v1886_v13 }
 0x21b   :  { %v530_v19 = vmul.f32 0.0625, %v529_v17  ;;  %v541_v20 = vadd.f32 %v540_v18, %v539_v16  ;;  %869 = vmatpush1.bf16.msra.mxu1 %v1884_v14  ;;  %v1887_v16 = vld [vmem:[%s2467_s11 + $0x10] ss:$8 sps:$4 sm:$0xff]   ;;  %v1942_v17 = vmov 0   ;;  %v1895_v14 = vld [vmem:[%s2469_s13 + $0x28] sm:$0xff]  }
 0x21c   :  { %870 = vmatprep.subr.bf16.mxu1 %v1889_v15  ;;  %900 = vmatprep.mubr.bf16.mxu1 %v1942_v17 }
 0x21d   :  { %v542_v21 = vmul.f32 0.0625, %v541_v20  ;;  %v543_v22 = vmul.f32 %v530_v19, %v530_v19 }
 0x21f   :  { %v544_v23 = vsub.f32 %v542_v21, %v543_v22  ;;  %871 = vmatpush1.bf16.msra.mxu1 %v1887_v16 }
 0x220   :  { %1779 = vmatprep.subr.bf16.mxu1 %v1936_v2 }
 0x221   :  { %v545_v24 = vmax.f32 %v544_v23, 0.0 }
 0x223   :  { %v547_v25 = vadd.f32 1e-05, %v545_v24 }
 0x225   :  { %1906 = vrsqrt.f32 %v547_v25 }
 0x22f   :  { %v1907_v27 = vpop.eup %1906 }
 0x230   :  { %v549_v28 = vmul.f32 %v1907_v27, %v546_v26  ;;  %v833_v27 = vld [vmem:[%s2468_s12] sm:$0x3]  ;;  %s1944_s12 = smov 16  }
 0x231   :  { %v838_v29 = vrot.slane %v833_v27, %v2146_v9 }
 0x232   :  { %v551_v32 = vmul.f32 %v549_v28, %v530_v19  ;;  %v557_v33 = vrot.slane %v549_v28, %v2146_v9  ;;  %v1617_v19 = vld [vmem:[%s2466_s10] ss:$0 sm:$0xff]  ;;  %v841_v28 = vsub.s32 1, %v2140_v7  ;;  %v1891_v7 = vld [vmem:[%s2469_s13 + $0x18] sm:$0xff]  }
 0x234   :  { %v552_v36 = vsub.f32 %v550_v31, %v551_v32  ;;  %v560_v37 = vmul.f32 %v557_v33, %v520_v61  ;;  %v559_v38 = vmul.f32 %v557_v33, %v519_v57  ;;  %v1881_v57 = vld [vmem:[%s2502_s1 + $0x30] sm:$0xff]   ;;  %v1883_v61 = vld [vmem:[%s2502_s1 + $0x38] sm:$0xff]   ;;  %v842_v30 = vrot.slane %v833_v27, %v841_v28 }
 0x235   :  { %1707 = vmatpush3.bf16.msra.mxu0 %v1881_v57  ;;  %v1890_v31 = vld [vmem:[%s2469_s13 + $0x10] sm:$0xff]  }
 0x236   :  { %v565_v40 = vrot.slane %v552_v36, %v2146_v9  ;;  %1708 = vmatprep.subr.bf16.mxu0 %v1882_v58 }
 0x238   :  { %v568_v43 = vadd.f32 %v565_v40, %v560_v37  ;;  %v567_v44 = vadd.f32 %v565_v40, %v559_v38 }
 0x239   :  { %1709 = vmatpush3.bf16.msra.mxu0 %v1883_v61 }
 0x23a   :  { %v570_v46 = vmax.f32 %v568_v43, 0.0  ;;  %v569_v47 = vmax.f32 %v567_v44, 0.0  ;;  %1803 = vmatprep.subr.bf16.mxu0 %v1936_v2 }
 0x23c   :  { %v587_v51 = vcombine.high %v569_v47, %v569_v47  ;;  %v580_v52 = vrot.slane %v569_v47, %v579_v45  ;;  %572 = vst.msk [vmem:[%s2480_s24] sm:$0x3] %vm571_vm6, %v569_v47  ;;  %606 = vst.msk [vmem:[%s2480_s24 + $0x2] sm:$0x3] %vm571_vm6, %v570_v46  ;;  %v620_v55 = vcombine.high %v570_v46, %v570_v46 }
 0x23d   :  { %v614_v56 = vrot.slane %v570_v46, %v579_v45 }
 0x23e   :  { %v594_v53 = vrot.slane %v587_v51, %v579_v45  ;;  %v581_v54 = vcombine.high %v580_v52, %v580_v52  ;;  %v627_v59 = vrot.slane %v620_v55, %v579_v45 }
 0x23f   :  { %v615_v60 = vcombine.high %v614_v56, %v614_v56 }
 0x240   :  { %595 = vrot.lane.b32.xlu1 %v594_v53, %s1939_s26  ;;  %582 = vrot.lane.b32.xlu0 %v581_v54, %s1940_s8  ;;  %v600_v62 = vcombine.high %v594_v53, %v594_v53  ;;  %v632_v63 = vcombine.high %v627_v59, %v627_v59 }
 0x244   :  { %628 = vrot.lane.b32.xlu1 %v627_v59, %s1939_s26  ;;  %616 = vrot.lane.b32.xlu0 %v615_v60, %s1940_s8 }
 0x248   :  { %633 = vrot.lane.b32.xlu1 %v632_v63, %s1941_s4  ;;  %601 = vrot.lane.b32.xlu0 %v600_v62, %s1941_s4 }
 0x2b2   :  { %v596_v0 = vpop.permute.xlu1 %595  ;;  %v583_v1 = vpop.permute.xlu0 %582 }
 0x2b3   :  { %586 = vst.msk [vmem:[%s2480_s24] sm:$0x3] %vm585_vm7, %v583_v1 }
 0x2b4   :  { %599 = vst.msk [vmem:[%s2480_s24] sm:$0x3] %vm598_vm8, %v596_v0  ;;  %v1892_v0 = vld [vmem:[%s2469_s13] sm:$0xff]  }
 0x2b6   :  { %v629_v3 = vpop.permute.xlu1 %628  ;;  %v617_v4 = vpop.permute.xlu0 %616 }
 0x2b7   :  { %619 = vst.msk [vmem:[%s2480_s24 + $0x2] sm:$0x3] %vm585_vm7, %v617_v4 }
 0x2b8   :  { %631 = vst.msk [vmem:[%s2480_s24 + $0x2] sm:$0x3] %vm598_vm8, %v629_v3 }
 0x2ba   :  { %v634_v5 = vpop.permute.xlu1 %633  ;;  %v602_v6 = vpop.permute.xlu0 %601 }
 0x2bb   :  { %636 = vst.msk [vmem:[%s2480_s24 + $0x2] sm:$0x3] %vm604_vm9, %v634_v5  ;;  %605 = vst.msk [vmem:[%s2480_s24] sm:$0x3] %vm604_vm9, %v602_v6  ;;  %v1893_v5 = vld [vmem:[%s2469_s13 + $0x8] sm:$0xff]  }
 0x2c2   :  { %v1616_v8 = vld.sshfl [vmem:[%s2480_s24] sm:$0x33 pattern:$0x76325410] }
 0x2c3   :  { %v678_v10 = vcombine.high %v1616_v8, %v1616_v8  ;;  %v681_v12 = vpack.c.bf16 %v1616_v8, %v1616_v8 }
 0x2c5   :  { %v682_v11 = vpack.c.bf16 %v678_v10, %v678_v10  ;;  %v1894_v10 = vld [vmem:[%s2469_s13 + $0x20] sm:$0xff]  }
 0x2c7   :  { %818 = vmatprep.mubr.bf16.mxu0 %v682_v11 }
 0x2c8   :  { %819 = vmatmul.mubr.bf16.vlgmr.msra.gmra.mrb[12].mxu0 %v681_v12 }
 0x2c9   :  { %1807 = vmatprep.mubr.msk.bf16.mxu0 %vm1937_vm2, %v1936_v2 }
 0x39b   :  { %v1710_v18 = vpop.f32.mrb[12].mxu0 }
 0x39c   :  { %v1711_v20 = vpop.f32.mrb[13].mxu0 }
 0x39d   :  { %v1712_v21 = vadd.f32 %v1711_v20, %v1710_v18  ;;  %v1713_v22 = vpop.f32.mrb[14].mxu0  ;;  %v1896_v18 = vld [vmem:[%s2473_s17 + $0x10] sm:$0xff]   ;;  %v1898_v20 = vld [vmem:[%s2473_s17 + $0x18] sm:$0xff]  }
 0x39e   :  { %v1714_v23 = vpop.f32.mrb[15].mxu0  ;;  %1804 = vmatpush3.bf16.msra.mxu0 %v1896_v18 }
 0x39f   :  { %v821_v24 = vadd.f32 %v1712_v21, %v1617_v19  ;;  %1805 = vmatprep.subr.bf16.mxu0 %v1936_v2  ;;  %v1897_v19 = vld [vmem:[%s2473_s17] sm:$0xff]   ;;  %v1899_v21 = vld [vmem:[%s2473_s17 + $0x8] sm:$0xff]  }
 0x3a1   :  { %v826_v25 = vmax.f32 %v821_v24, 0.0 }
 0x3a2   :  { %1806 = vmatpush3.bf16.msra.mxu0 %v1898_v20 }
 0x3a3   :  { %v832_v26 = vpack.c.bf16 %v826_v25, %v826_v25  ;;  %827 = vst.msk [vmem:[#allocation2] sm:$0x3] %vm571_vm6, %v826_v25  ;;  %1819 = vmatprep.subr.bf16.mxu0 %v1936_v2 }
 0x3a5   :  { %1638 = vmatmul.mubr.msk.bf16.vlgmr.msra.gmra.mrb[12].mxu1 %vm259_vm5, %v832_v26 }
 0x3a6   :  { %1783 = vmatprep.mubr.msk.bf16.mxu1 %vm1937_vm2, %v1936_v2  ;;  %1780 = vmatpush3.bf16.msra.mxu1 %v1890_v31 }
 0x3a7   :  { %1781 = vmatprep.subr.bf16.mxu1 %v1936_v2 }
 0x3aa   :  { %1782 = vmatpush3.bf16.msra.mxu1 %v1891_v7 }
 0x3ab   :  { %1787 = vmatprep.subr.bf16.mxu1 %v1936_v2 }
 0x478   :  { %v902_v32 = vpop.f32.mrb[12].mxu1 }
 0x479   :  { %v903_v33 = vadd.f32 %v902_v32, %v838_v29  ;;  %v904_v34 = vpop.f32.mrb[13].mxu1 }
 0x47a   :  { %v905_v35 = vadd.f32 %v904_v34, %v842_v30  ;;  %v906_v36 = vpop.f32.mrb[14].mxu1 }
 0x47b   :  { %v909_v37 = vmax.f32 %v903_v33, 0.0  ;;  %v907_v38 = vpop.f32.mrb[15].mxu1  ;;  %v1656_v33 = vld [vmem:[%s2470_s14] ss:$0 sm:$0xff] }
 0x47c   :  { %v910_v39 = vmax.f32 %v905_v35, 0.0 }
 0x47d   :  { %v916_v40 = vrot.slane %v909_v37, 4  ;;  %v912_v41 = vrot.slane %v909_v37, 6  ;;  %v920_v46 = vrot.slane %v909_v37, 2 }
 0x47e   :  { %v929_v42 = vrot.slane %v910_v39, 4  ;;  %v925_v43 = vrot.slane %v910_v39, 6  ;;  %v933_v47 = vrot.slane %v910_v39, 2 }
 0x480   :  { %v1852_v44 = vpack.i.bf16 %v929_v42, %v916_v40  ;;  %v1847_v45 = vpack.i.bf16 %v925_v43, %v912_v41  ;;  %v1857_v48 = vpack.i.bf16 %v933_v47, %v920_v46 }
 0x482   :  { %1853 = vrot.lane.b32.xlu1 %v1852_v44, %s1939_s26  ;;  %1848 = vrot.lane.b32.xlu0 %v1847_v45, %s1941_s4 }
 0x486   :  { %1858 = vrot.lane.b32.xlu0 %v1857_v48, %s1940_s8 }
 0x4f4   :  { %v1854_v49 = vpop.permute.xlu1 %1853  ;;  %v1849_v50 = vpop.permute.xlu0 %1848 }
 0x4f5   :  { %v1851_v51 = vunpack.i.h.bf16 %v1849_v50  ;;  %v1850_v52 = vunpack.i.l.bf16 %v1849_v50  ;;  %v1856_v53 = vunpack.i.h.bf16 %v1854_v49  ;;  %v1855_v54 = vunpack.i.l.bf16 %v1854_v49 }
 0x4f7   :  { %v940_v55 = vsel %vm83_vm3, %v910_v39, %v1851_v51  ;;  %v937_v56 = vsel %vm83_vm3, %v909_v37, %v1850_v52 }
 0x4f8   :  { %v1859_v57 = vpop.permute.xlu0 %1858  ;;  %v938_v60 = vsel %vm106_vm0, %v937_v56, %v1855_v54  ;;  %v941_v61 = vsel %vm106_vm0, %v940_v55, %v1856_v53 }
 0x4f9   :  { %v1861_v58 = vunpack.i.h.bf16 %v1859_v57  ;;  %v1860_v59 = vunpack.i.l.bf16 %v1859_v57 }
 0x4fb   :  { %v939_v62 = vsel %vm90_vm4, %v938_v60, %v1860_v59  ;;  %v942_v63 = vsel %vm90_vm4, %v941_v61, %v1861_v58 }
 0x4fc   :  { %v967_v1 = vpack.c.bf16 %v942_v63, %v939_v62  ;;  %v945_v3 = vrot.slane %v939_v62, 6  ;;  %v946_v4 = vrot.slane %v942_v63, 6  ;;  %v951_v12 = vrot.slane %v939_v62, 2 }
 0x4fd   :  { %v952_v13 = vrot.slane %v942_v63, 2 }
 0x4fe   :  { %1784 = vmatmul.mubr.msk.bf16.vlgmr.msra.gmra.mrb[16].mxu1 %vm259_vm5, %v967_v1  ;;  %v947_v6 = vsel %vm83_vm3, %v945_v3, %v946_v4  ;;  %v950_v8 = vsel %vm83_vm3, 0.0, %v945_v3  ;;  %v1178_v3 = vld [vmem:[%s2471_s15] sm:$0x1] }
 0x4ff   :  { %1788 = vmatpush3.bf16.msra.mxu1 %v1892_v0  ;;  %1791 = vmatprep.mubr.msk.bf16.mxu1 %vm1937_vm2, %v1936_v2  ;;  %v961_v11 = vpack.c.bf16 %v947_v6, %v950_v8  ;;  %v953_v15 = vsel %vm90_vm4, %v951_v12, %v952_v13  ;;  %v956_v16 = vsel %vm90_vm4, %v952_v13, 0.0  ;;  %v1182_v6 = vld [vmem:[%s2472_s16] sm:$0x1] }
 0x500   :  { %1789 = vmatprep.subr.bf16.mxu1 %v1936_v2  ;;  %v1085_v17 = vpack.c.bf16 %v956_v16, %v953_v15 }
 0x503   :  { %1790 = vmatpush3.bf16.msra.mxu1 %v1893_v5 }
 0x504   :  { %1795 = vmatprep.subr.bf16.mxu1 %v1936_v2 }
 0x506   :  { %1792 = vmatmul.mubr.msk.bf16.vlgmr.msra.gmra.mrb[20].mxu1 %vm259_vm5, %v961_v11 }
 0x507   :  { %1796 = vmatpush3.bf16.msra.mxu1 %v1894_v10  ;;  %1799 = vmatprep.mubr.msk.bf16.mxu1 %vm1937_vm2, %v1936_v2 }
 0x508   :  { %1797 = vmatprep.subr.bf16.mxu1 %v1936_v2 }
 0x50b   :  { %1798 = vmatpush3.bf16.msra.mxu1 %v1895_v14 }
 0x50c   :  { %1811 = vmatprep.subr.bf16.mxu1 %v1936_v2 }
 0x50e   :  { %1800 = vmatmul.mubr.msk.bf16.vlgmr.msra.gmra.mrb[24].mxu1 %vm259_vm5, %v1085_v17 }
 0x50f   :  { %1815 = vmatprep.mubr.msk.bf16.mxu1 %vm1937_vm2, %v1936_v2  ;;  %1812 = vmatpush3.bf16.msra.mxu1 %v1897_v19  ;;  %v1900_v19 = vld [vmem:[%s2473_s17 + $0x20] sm:$0xff]  }
 0x510   :  { %1813 = vmatprep.subr.bf16.mxu1 %v1936_v2 }
 0x513   :  { %1814 = vmatpush3.bf16.msra.mxu1 %v1899_v21 }
 0x514   :  { %1827 = vmatprep.subr.bf16.mxu1 %v1936_v2 }
 0x5d1   :  { %v1017_v22 = vpop.f32.mrb[16].mxu1 }
 0x5d2   :  { %v1785_v23 = vpop.f32.mrb[17].mxu1 }
 0x5d3   :  { %v1020_v24 = vpop.f32.mrb[18].mxu1 }
 0x5d4   :  { %v1786_v25 = vpop.f32.mrb[19].mxu1 }
 0x5d9   :  { %v1073_v26 = vpop.f32.mrb[20].mxu1 }
 0x5da   :  { %v1074_v27 = vadd.f32 %v1073_v26, %v1017_v22  ;;  %v1793_v28 = vpop.f32.mrb[21].mxu1 }
 0x5db   :  { %v1076_v29 = vpop.f32.mrb[22].mxu1 }
 0x5dc   :  { %v1077_v30 = vadd.f32 %v1076_v29, %v1020_v24  ;;  %v1794_v31 = vpop.f32.mrb[23].mxu1  ;;  %v1901_v29 = vld [vmem:[%s2473_s17 + $0x28] sm:$0xff]  }
 0x5e1   :  { %v1135_v32 = vpop.f32.mrb[24].mxu1 }
 0x5e2   :  { %v1142_v34 = vadd.f32 %v1135_v32, %v1074_v27  ;;  %v1801_v35 = vpop.f32.mrb[25].mxu1  ;;  %v1902_v32 = vld [vmem:[%s2477_s21] sm:$0xff]  }
 0x5e3   :  { %v1138_v36 = vpop.f32.mrb[26].mxu1 }
 0x5e4   :  { %v1151_v37 = vadd.f32 %v1656_v33, %v1142_v34  ;;  %v1143_v38 = vadd.f32 %v1138_v36, %v1077_v30  ;;  %v1802_v7 = vpop.f32.mrb[27].mxu1 }
 0x5e6   :  { %v1163_v39 = vmul.f32 %v1151_v37, %v1151_v37  ;;  %v1152_v40 = vadd.f32 %v1656_v33, %v1143_v38  ;;  %v1153_v41 = vsel %vm259_vm5, %v1151_v37, 0.0  ;;  %v1903_v33 = vld [vmem:[%s2477_s21 + $0x8] sm:$0xff]  }
 0x5e8   :  { %v1154_v42 = vsel %vm259_vm5, %v1152_v40, 0.0  ;;  %v1164_v43 = vmul.f32 %v1152_v40, %v1152_v40  ;;  %v1165_v45 = vsel %vm259_vm5, %v1163_v39, 0.0 }
 0x5e9   :  { %v1155_v44 = vadd.f32 %v1154_v42, %v1153_v41 }
 0x5ea   :  { %v1166_v46 = vsel %vm259_vm5, %v1164_v43, 0.0 }
 0x5eb   :  { %v1156_v47 = vrot.slane %v1155_v44, 4  ;;  %v1167_v48 = vadd.f32 %v1166_v46, %v1165_v45 }
 0x5ed   :  { %v1157_v49 = vadd.f32 %v1156_v47, %v1155_v44  ;;  %v1168_v50 = vrot.slane %v1167_v48, 4 }
 0x5ef   :  { %v1158_v51 = vrot.slane %v1157_v49, 2  ;;  %v1169_v52 = vadd.f32 %v1168_v50, %v1167_v48 }
 0x5f1   :  { %v1159_v53 = vadd.f32 %v1158_v51, %v1157_v49  ;;  %v1170_v54 = vrot.slane %v1169_v52, 2 }
 0x5f3   :  { %v1160_v55 = vrot.slane %v1159_v53, 1  ;;  %v1171_v56 = vadd.f32 %v1170_v54, %v1169_v52 }
 0x5f5   :  { %v1161_v57 = vadd.f32 %v1160_v55, %v1159_v53  ;;  %v1172_v58 = vrot.slane %v1171_v56, 1 }
 0x5f7   :  { %v1162_v59 = vmul.f32 0.0625, %v1161_v57  ;;  %v1173_v60 = vadd.f32 %v1172_v58, %v1171_v56 }
 0x5f9   :  { %v1174_v61 = vmul.f32 0.0625, %v1173_v60  ;;  %v1175_v62 = vmul.f32 %v1162_v59, %v1162_v59 }
 0x5fb   :  { %v1176_v63 = vsub.f32 %v1174_v61, %v1175_v62 }
 0x5fd   :  { %v1177_v0 = vmax.f32 %v1176_v63, 0.0 }
 0x5ff   :  { %v1179_v1 = vadd.f32 1e-05, %v1177_v0 }
 0x601   :  { %1908 = vrsqrt.f32 %v1179_v1 }
 0x60b   :  { %v1909_v4 = vpop.eup %1908 }
 0x60c   :  { %v1181_v5 = vmul.f32 %v1909_v4, %v1178_v3 }
 0x60e   :  { %v1183_v8 = vmul.f32 %v1181_v5, %v1162_v59  ;;  %v1189_v10 = vrot.slane %v1181_v5, %v2146_v9 }
 0x610   :  { %v1184_v11 = vsub.f32 %v1182_v6, %v1183_v8  ;;  %v1191_v12 = vmul.f32 %v1189_v10, %v1151_v37  ;;  %v1192_v13 = vmul.f32 %v1189_v10, %v1152_v40 }
 0x612   :  { %v1197_v14 = vrot.slane %v1184_v11, %v2146_v9 }
 0x614   :  { %v1199_v15 = vadd.f32 %v1197_v14, %v1191_v12  ;;  %v1200_v16 = vadd.f32 %v1197_v14, %v1192_v13 }
 0x616   :  { %v1201_v17 = vmax.f32 %v1199_v15, 0.0  ;;  %v1202_v18 = vmax.f32 %v1200_v16, 0.0  ;;  %v1438_v16 = vld [vmem:[%s2475_s19] sm:$0x1] }
 0x618   :  { %v1206_v20 = vrot.slane %v1202_v18, 6  ;;  %v1212_v21 = vrot.slane %v1202_v18, 2  ;;  %v1227_v22 = vpack.c.bf16 %v1202_v18, %v1201_v17  ;;  %v1205_v23 = vrot.slane %v1201_v17, 6 }
 0x619   :  { %v1211_v24 = vrot.slane %v1201_v17, 2 }
 0x61a   :  { %1808 = vmatmul.mubr.msk.bf16.vlgmr.msra.gmra.mrb[16].mxu0 %vm259_vm5, %v1227_v22  ;;  %v1207_v25 = vsel %vm83_vm3, %v1205_v23, %v1206_v20  ;;  %v1210_v26 = vsel %vm83_vm3, 0.0, %v1205_v23  ;;  %v1216_v27 = vsel %vm90_vm4, %v1212_v21, 0.0 }
 0x61b   :  { %1820 = vmatpush3.bf16.msra.mxu0 %v1900_v19  ;;  %v1221_v28 = vpack.c.bf16 %v1207_v25, %v1210_v26  ;;  %1823 = vmatprep.mubr.msk.bf16.mxu0 %vm1937_vm2, %v1936_v2  ;;  %v1213_v30 = vsel %vm90_vm4, %v1211_v24, %v1212_v21  ;;  %v1442_v19 = vld [vmem:[%s2476_s20] sm:$0x1]  ;;  %s1943_s20 = smov [#allocation2]  }
 0x61c   :  { %1821 = vmatprep.subr.bf16.mxu0 %v1936_v2  ;;  %v1345_v31 = vpack.c.bf16 %v1216_v27, %v1213_v30  ;;  %s1580_s1 = sshll.u32 %s1943_s20, 4  ;;  %s1581_s1 = int_to_ptr.vmem [resolvable:$true] %s1580_s1 }
 0x61d   :  { %1816 = vmatmul.mubr.msk.bf16.vlgmr.msra.gmra.mrb[28].mxu1 %vm259_vm5, %v1221_v28  ;;  %s1912_s14 = scalar_lea.vmem %s1581_s1, 32  ;;  %p1917_p1 = scmp.lt.s32.totalorder %s1581_s1, %s1581_s1 }
 0x61e   :  { %1831 = vmatprep.mubr.msk.bf16.mxu1 %vm1937_vm2, %v1936_v2  ;;  %1828 = vmatpush3.bf16.msra.mxu1 %v1902_v32  ;;  %p1913_p0 = scmp.ne.s32.totalorder %s1581_s1, %s1912_s14  ;;  %p1918_p2 = scmp.lt.s32.totalorder %s1912_s14, %s1912_s14 }
 0x61f   :  { %1822 = vmatpush3.bf16.msra.mxu0 %v1901_v29  ;;  %1829 = vmatprep.subr.bf16.mxu1 %v1936_v2  ;;  %v1674_v2 = vld [vmem:[%s2474_s18] ss:$0 sm:$0xff] }
 0x620   :  { %p1919_p3 = por %p1918_p2, %p1917_p1 }
 0x622   :  { %1824 = vmatmul.mubr.msk.bf16.vlgmr.msra.gmra.mrb[20].mxu0 %vm259_vm5, %v1345_v31  ;;  %1830 = vmatpush3.bf16.msra.mxu1 %v1903_v33  ;;  %v1675_v31 = vld [vmem:[%s2478_s22] ss:$0 sm:$0xff]  ;;  %p1920_p4 = pnand %p1919_p3, %p1913_p0 }
 0x6ed   :  { %v1277_v34 = vpop.f32.mrb[16].mxu0 }
 0x6ee   :  { %v1809_v35 = vpop.f32.mrb[17].mxu0 }
 0x6ef   :  { %v1280_v36 = vpop.f32.mrb[18].mxu0 }
 0x6f0   :  { %v1810_v37 = vpop.f32.mrb[19].mxu0  ;;  %v1333_v38 = vpop.f32.mrb[28].mxu1 }
 0x6f1   :  { %v1334_v7 = vadd.f32 %v1333_v38, %v1277_v34  ;;  %v1817_v39 = vpop.f32.mrb[29].mxu1 }
 0x6f2   :  { %v1336_v40 = vpop.f32.mrb[30].mxu1 }
 0x6f3   :  { %v1337_v41 = vadd.f32 %v1336_v40, %v1280_v36  ;;  %v1818_v42 = vpop.f32.mrb[31].mxu1 }
 0x6f5   :  { %v1395_v43 = vpop.f32.mrb[20].mxu0 }
 0x6f6   :  { %v1402_v44 = vadd.f32 %v1395_v43, %v1334_v7  ;;  %v1825_v45 = vpop.f32.mrb[21].mxu0 }
 0x6f7   :  { %v1398_v46 = vpop.f32.mrb[22].mxu0 }
 0x6f8   :  { %v1411_v47 = vadd.f32 %v1674_v2, %v1402_v44  ;;  %v1403_v48 = vadd.f32 %v1398_v46, %v1337_v41  ;;  %v1826_v49 = vpop.f32.mrb[23].mxu0 }
 0x6fa   :  { %v1423_v50 = vmul.f32 %v1411_v47, %v1411_v47  ;;  %v1412_v51 = vadd.f32 %v1674_v2, %v1403_v48  ;;  %v1413_v52 = vsel %vm259_vm5, %v1411_v47, 0.0 }
 0x6fc   :  { %v1414_v53 = vsel %vm259_vm5, %v1412_v51, 0.0  ;;  %v1424_v54 = vmul.f32 %v1412_v51, %v1412_v51  ;;  %v1425_v56 = vsel %vm259_vm5, %v1423_v50, 0.0 }
 0x6fd   :  { %v1415_v55 = vadd.f32 %v1414_v53, %v1413_v52 }
 0x6fe   :  { %v1426_v57 = vsel %vm259_vm5, %v1424_v54, 0.0 }
 0x6ff   :  { %v1416_v58 = vrot.slane %v1415_v55, 4  ;;  %v1427_v59 = vadd.f32 %v1426_v57, %v1425_v56 }
 0x701   :  { %v1417_v60 = vadd.f32 %v1416_v58, %v1415_v55  ;;  %v1428_v61 = vrot.slane %v1427_v59, 4 }
 0x703   :  { %v1418_v62 = vrot.slane %v1417_v60, 2  ;;  %v1429_v63 = vadd.f32 %v1428_v61, %v1427_v59 }
 0x705   :  { %v1419_v0 = vadd.f32 %v1418_v62, %v1417_v60  ;;  %v1430_v1 = vrot.slane %v1429_v63, 2 }
 0x707   :  { %v1420_v3 = vrot.slane %v1419_v0, 1  ;;  %v1431_v4 = vadd.f32 %v1430_v1, %v1429_v63 }
 0x709   :  { %v1421_v5 = vadd.f32 %v1420_v3, %v1419_v0  ;;  %v1432_v6 = vrot.slane %v1431_v4, 1 }
 0x70b   :  { %v1422_v8 = vmul.f32 0.0625, %v1421_v5  ;;  %v1433_v10 = vadd.f32 %v1432_v6, %v1431_v4 }
 0x70d   :  { %v1434_v11 = vmul.f32 0.0625, %v1433_v10  ;;  %v1435_v12 = vmul.f32 %v1422_v8, %v1422_v8 }
 0x70f   :  { %v1436_v13 = vsub.f32 %v1434_v11, %v1435_v12 }
 0x711   :  { %v1437_v14 = vmax.f32 %v1436_v13, 0.0 }
 0x713   :  { %v1439_v15 = vadd.f32 1e-05, %v1437_v14 }
 0x715   :  { %1910 = vrsqrt.f32 %v1439_v15 }
 0x71f   :  { %v1911_v17 = vpop.eup %1910 }
 0x720   :  { %v1441_v18 = vmul.f32 %v1911_v17, %v1438_v16 }
 0x722   :  { %v1443_v20 = vmul.f32 %v1441_v18, %v1422_v8  ;;  %v1449_v21 = vrot.slane %v1441_v18, %v2146_v9 }
 0x724   :  { %v1444_v22 = vsub.f32 %v1442_v19, %v1443_v20  ;;  %v1451_v23 = vmul.f32 %v1449_v21, %v1411_v47  ;;  %v1452_v24 = vmul.f32 %v1449_v21, %v1412_v51 }
 0x726   :  { %v1457_v25 = vrot.slane %v1444_v22, %v2146_v9 }
 0x728   :  { %v1459_v26 = vadd.f32 %v1457_v25, %v1451_v23  ;;  %v1460_v27 = vadd.f32 %v1457_v25, %v1452_v24 }
 0x72a   :  { %v1461_v28 = vmax.f32 %v1459_v26, 0.0  ;;  %v1462_v29 = vmax.f32 %v1460_v27, 0.0 }
 0x72c   :  { %v1467_v30 = vpack.c.bf16 %v1462_v29, %v1461_v28 }
 0x72e   :  { %1832 = vmatmul.mubr.msk.bf16.vlgmr.msra.gmra.mrb[32].mxu1 %vm259_vm5, %v1467_v30 }
 0x801   :  { %v1524_v32 = vpop.f32.mrb[32].mxu1 }
 0x802   :  { %v1525_v33 = vadd.f32 %v1675_v31, %v1524_v32  ;;  %v1833_v34 = vpop.f32.mrb[33].mxu1 }
 0x803   :  { %v1527_v35 = vpop.f32.mrb[34].mxu1 }
 0x804   :  { %1539 = vrot.lane.b32.xlu0 %v1525_v33, %s1940_s8  ;;  %1534 = vrot.lane.b32.xlu1 %v1525_v33, %s1944_s12  ;;  %v1834_v9 = vpop.f32.mrb[35].mxu1  ;;  %1532 = vst.msk [vmem:[%s2479_s23] sm:$0x3] %vm1531_vm10, %v1525_v33 }
 0x805   :  { %1923 = shalt.err (!%p1920_p4)
}
 0x806   :  { %s1924_s29 = scalar_lea.hbm %s2481_s25, 32 }
 0x807   :  { %p1925_p5 = scmp.ne.s32.totalorder %s2481_s25, %s1924_s29  ;;  %p1928_p6 = scmp.lt.u32.totalorder %s1924_s29, %s2481_s25 }
 0x809   :  { %p1930_p7 = pnand %p1928_p6, %p1925_p5 }
 0x80b   :  { %1933 = shalt.err (!%p1930_p7)
}
 0x80c   :  { %1583 = dma.vmem_to_hbm [thread:$0]  %s1581_s1, 32, %s2481_s25, [#allocation3]   ;;  %v1528_v36 = vadd.f32 %v1675_v31, %v1527_v35  ;;  %vm1537_vm11 = vcmask 257154   ;;  %vm1542_vm12 = vcmask 390404   ;;  %vm1547_vm13 = vcmask 523654  }
 0x80d   :  { %s1945_s30 = smov 48   ;;  %s1946_s7 = smov 80   ;;  %vm1553_vm14 = vcmask 648704   ;;  %vm1558_vm15 = vcmask 781954   ;;  %vm1563_vm0 = vcmask 915204   ;;  %vm1568_vm1 = vcmask 1048454  }
 0x80e   :  { %1544 = vrot.lane.b32.xlu1 %v1525_v33, %s1945_s30  ;;  %1550 = vrot.lane.b32.xlu0 %v1528_v36, %s1939_s26  ;;  %s1947_s17 = smov 112  }
 0x812   :  { %1555 = vrot.lane.b32.xlu1 %v1528_v36, %s1946_s7  ;;  %1560 = vrot.lane.b32.xlu0 %v1528_v36, %s1941_s4 }
 0x816   :  { %1565 = vrot.lane.b32.xlu1 %v1528_v36, %s1947_s17 }
 0x876   :  { %v1540_v37 = vpop.permute.xlu0 %1539  ;;  %v1535_v38 = vpop.permute.xlu1 %1534 }
 0x877   :  { %1538 = vst.msk [vmem:[%s2479_s23 - $0x2] sm:$0xc] %vm1537_vm11, %v1535_v38 }
 0x878   :  { %1543 = vst.msk [vmem:[%s2479_s23 - $0x4] sm:$0x30] %vm1542_vm12, %v1540_v37 }
 0x880   :  { %v1545_v7 = vpop.permute.xlu1 %1544  ;;  %v1551_v39 = vpop.permute.xlu0 %1550 }
 0x881   :  { %1548 = vst.msk [vmem:[%s2479_s23 - $0x6] sm:$0xc0] %vm1547_vm13, %v1545_v7 }
 0x882   :  { %1554 = vst.msk [vmem:[%s2479_s23] sm:$0x3] %vm1553_vm14, %v1551_v39 }
 0x884   :  { %v1556_v40 = vpop.permute.xlu1 %1555  ;;  %v1561_v41 = vpop.permute.xlu0 %1560 }
 0x885   :  { %1559 = vst.msk [vmem:[%s2479_s23 - $0x2] sm:$0xc] %vm1558_vm15, %v1556_v40 }
 0x886   :  { %1564 = vst.msk [vmem:[%s2479_s23 - $0x4] sm:$0x30] %vm1563_vm0, %v1561_v41 }
 0x888   :  { %v1566_v42 = vpop.permute.xlu1 %1565 }
 0x889   :  { %1569 = vst.msk [vmem:[%s2479_s23 - $0x6] sm:$0xc0] %vm1568_vm1, %v1566_v42 }
 0x88a   :  { %1934 = dma.done.wait [#allocation3], 32  }
 0x88b   :  { %1935 = vsyncadd [#allocation3], 4294967264 }
 0x88c   :  { %1591 = vsyncpa [#allocation3], 1 }

</bundles_post_ra>
